<compile_context>
chip_gen: v6e
topology: v6e:2x2x1
jax: 0.10.0
libtpu: 0.0.40
codegen_flags: <defaults>
</compile_context>

<pallas_src>
import jax
import jax.numpy as jnp
from jax.experimental import pallas as pl
from jax.experimental.pallas import tpu as pltpu

NEG_SLOPE = 0.01  # F.leaky_relu default negative_slope


def _round_up(x, m):
    return (x + m - 1) // m * m


def _leaky_relu(x):
    # max(x, a*x) == leaky_relu(x) for 0 < a < 1
    return jnp.maximum(x, NEG_SLOPE * x)


def expander_kernel(idx_ref, emb_ref, w1_ref, b1_ref, w2_ref, b2_ref,
                    w3_ref, b3_ref, out_ref):
    tb = idx_ref.shape[0]
    hot = emb_ref.shape[0]

    # Embedding gather as a one-hot matmul on the MXU.
    idx = idx_ref[...]                                           # (TB, 1) int32
    lanes = jax.lax.broadcasted_iota(jnp.int32, (tb, hot), 1)    # (TB, HOT)
    onehot = (lanes == idx).astype(jnp.float32)
    e = jnp.dot(onehot, emb_ref[...], preferred_element_type=jnp.float32)

    # map1(tanh(e))
    h = jnp.dot(jnp.tanh(e), w1_ref[...],
                preferred_element_type=jnp.float32) + b1_ref[...]
    # map2(leaky_relu(h1))
    h = jnp.dot(_leaky_relu(h), w2_ref[...],
                preferred_element_type=jnp.float32) + b2_ref[...]
    # map3(leaky_relu(h2)) -- no activation on the final output
    h = jnp.dot(_leaky_relu(h), w3_ref[...],
                preferred_element_type=jnp.float32) + b3_ref[...]

    out_ref[...] = h.astype(out_ref.dtype)


def _pad2(a, rows, cols):
    return jnp.pad(a, ((0, rows - a.shape[0]), (0, cols - a.shape[1])))


def expander_forward(idx, params, *, block_batch=512):
    """idx: (B,) integer indices.  params: emb (hot, E); W_i stored (in, out)
    [pre-transposed vs. PyTorch's (out, in)]; b_i (1, out)."""
    emb, W1, b1 = params["emb"], params["W1"], params["b1"]
    W2, b2, W3, b3 = params["W2"], params["b2"], params["W3"], params["b3"]

    hot, E = emb.shape
    H = W3.shape[1]
    B = idx.shape[0]

    # Zero-pad feature dims to lane-dense multiples of 128 (inert padding).
    hot_p = _round_up(hot, 128)
    e_p = _round_up(E, 128)
    h_p = _round_up(H, 128)

    emb_p = _pad2(emb, hot_p, e_p)
    w1_p, b1_p = _pad2(W1, e_p, h_p), _pad2(b1, 1, h_p)
    w2_p, b2_p = _pad2(W2, h_p, h_p), _pad2(b2, 1, h_p)
    w3_p, b3_p = _pad2(W3, h_p, h_p), _pad2(b3, 1, h_p)

    # Batch tiling: largest tile <= block_batch, multiple of 8 sublanes.
    tb = _round_up(min(block_batch, _round_up(B, 8)), 8)
    b_p = _round_up(B, tb)
    idx_p = jnp.pad(idx.astype(jnp.int32), (0, b_p - B)).reshape(b_p, 1)

    const2 = lambda i: (0, 0)   # weights/table: same block every step -> resident
    grid = (pl.cdiv(b_p, tb),)

    out = pl.pallas_call(
        expander_kernel,
        out_shape=jax.ShapeDtypeStruct((b_p, h_p), jnp.float32),
        grid=grid,
        in_specs=[
            pl.BlockSpec((tb, 1), lambda i: (i, 0)),       # indices: streamed
            pl.BlockSpec((hot_p, e_p), const2),            # embedding table
            pl.BlockSpec((e_p, h_p), const2),              # W1
            pl.BlockSpec((1, h_p), const2),                # b1
            pl.BlockSpec((h_p, h_p), const2),              # W2
            pl.BlockSpec((1, h_p), const2),                # b2
            pl.BlockSpec((h_p, h_p), const2),              # W3
            pl.BlockSpec((1, h_p), const2),                # b3
        ],
        out_specs=pl.BlockSpec((tb, h_p), lambda i: (i, 0)),
        compiler_params=pltpu.CompilerParams(
            dimension_semantics=("parallel",),
            vmem_limit_bytes=32 * 1024 * 1024,
        ),
    )(idx_p, emb_p, w1_p, b1_p, w2_p, b2_p, w3_p, b3_p)

    return out[:B, :H]


def init_expander_params(key, hot_size, expand_dim_width, extra=16):
    """Mimics the PyTorch init: 0.001*randn embedding; nn.Linear uniform."""
    E = extra * expand_dim_width
    H = expand_dim_width
    ks = jax.random.split(key, 7)

    emb = 0.001 * jax.random.normal(ks[0], (hot_size, E), jnp.float32)

    def linear(kw, kb, fan_in, fan_out):
        bound = 1.0 / jnp.sqrt(jnp.float32(fan_in))
        W = jax.random.uniform(kw, (fan_in, fan_out), jnp.float32, -bound, bound)
        b = jax.random.uniform(kb, (1, fan_out), jnp.float32, -bound, bound)
        return W, b

    W1, b1 = linear(ks[1], ks[2], E, H)
    W2, b2 = linear(ks[3], ks[4], H, H)
    W3, b3 = linear(ks[5], ks[6], H, H)
    return {"emb": emb, "W1": W1, "b1": b1, "W2": W2, "b2": b2,
            "W3": W3, "b3": b3}


def expander_reference(idx, p):
    """Plain-JAX reference of the PyTorch forward pass."""
    e = p["emb"][idx]
    h = jnp.tanh(e) @ p["W1"] + p["b1"]
    h = jax.nn.leaky_relu(h, NEG_SLOPE) @ p["W2"] + p["b2"]
    h = jax.nn.leaky_relu(h, NEG_SLOPE) @ p["W3"] + p["b3"]
    return h


if __name__ == "__main__":
    key = jax.random.PRNGKey(0)
    k_idx, k_p = jax.random.split(key)

    hot_size, expand_dim_width, extra = 64, 32, 16
    batch = 300  # deliberately not a multiple of the batch tile

    idx = jax.random.randint(k_idx, (batch,), 0, hot_size, jnp.int32)
    params = init_expander_params(k_p, hot_size, expand_dim_width, extra)

    # Small block_batch so the demo exercises a multi-step pipelined grid
    # (default 512 is the production-size tile).
    out = expander_forward(idx, params, block_batch=128)
    jax.block_until_ready(out)

    ref = expander_reference(idx, params)
    assert out.shape == (batch, expand_dim_width), out.shape
    assert jnp.allclose(out, ref, atol=3e-5, rtol=1e-4), \
        float(jnp.max(jnp.abs(out - ref)))

    print("KERNEL_OK")
</pallas_src>

<mosaic_0001>
module attributes {stable_mosaic.version = 11 : i64} {
  func.func @expander_kernel(%arg0: i32, %arg1: memref<128x1xi32, #tpu.memory_space<vmem>>, %arg2: memref<128x512xf32, #tpu.memory_space<vmem>>, %arg3: memref<512x128xf32, #tpu.memory_space<vmem>>, %arg4: memref<1x128xf32, #tpu.memory_space<vmem>>, %arg5: memref<128x128xf32, #tpu.memory_space<vmem>>, %arg6: memref<1x128xf32, #tpu.memory_space<vmem>>, %arg7: memref<128x128xf32, #tpu.memory_space<vmem>>, %arg8: memref<1x128xf32, #tpu.memory_space<vmem>>, %arg9: memref<128x128xf32, #tpu.memory_space<vmem>>) attributes {dimension_semantics = [#tpu.dimension_semantics<parallel>], iteration_bounds = array<i64: 3>, scalar_prefetch = 0 : i64, scratch_operands = 0 : i64, tpu.core_type = #tpu.core_type<tc>, window_params = [{transform_indices = @transform_0, window_bounds = array<i64: 128, 1>}, {pipeline_mode = #tpu.pipeline_mode<synchronous>, transform_indices = @transform_1, window_bounds = array<i64: 128, 512>}, {pipeline_mode = #tpu.pipeline_mode<synchronous>, transform_indices = @transform_2, window_bounds = array<i64: 512, 128>}, {pipeline_mode = #tpu.pipeline_mode<synchronous>, transform_indices = @transform_3, window_bounds = array<i64: 1, 128>}, {pipeline_mode = #tpu.pipeline_mode<synchronous>, transform_indices = @transform_4, window_bounds = array<i64: 128, 128>}, {pipeline_mode = #tpu.pipeline_mode<synchronous>, transform_indices = @transform_5, window_bounds = array<i64: 1, 128>}, {pipeline_mode = #tpu.pipeline_mode<synchronous>, transform_indices = @transform_6, window_bounds = array<i64: 128, 128>}, {pipeline_mode = #tpu.pipeline_mode<synchronous>, transform_indices = @transform_7, window_bounds = array<i64: 1, 128>}, {transform_indices = @transform_8, window_bounds = array<i64: 128, 128>}]} {
    %c0 = arith.constant 0 : index
    %c0_0 = arith.constant 0 : index
    %0 = vector.load %arg1[%c0, %c0_0] : memref<128x1xi32, #tpu.memory_space<vmem>>, vector<128x1xi32>
    %1 = tpu.iota {dimensions = array<i32: 1>} : vector<128x128xi32>
    %2 = vector.broadcast %0 : vector<128x1xi32> to vector<128x128xi32>
    %3 = arith.cmpi eq, %1, %2 : vector<128x128xi32>
    %4 = arith.extui %3 : vector<128x128xi1> to vector<128x128xi32>
    %5 = arith.sitofp %4 : vector<128x128xi32> to vector<128x128xf32>
    %c0_1 = arith.constant 0 : index
    %c0_2 = arith.constant 0 : index
    %6 = vector.load %arg2[%c0_1, %c0_2] : memref<128x512xf32, #tpu.memory_space<vmem>>, vector<128x512xf32>
    %cst = arith.constant dense<0.000000e+00> : vector<128x512xf32>
    %7 = tpu.matmul %5, %6, %cst {dimension_numbers = #tpu.dot_dimension_numbers<[1], [0], [0], [1], [0, 0, 1, 1], [], []>} : vector<128x128xf32>, vector<128x512xf32>, vector<128x512xf32> -> vector<128x512xf32>
    %8 = math.tanh %7 : vector<128x512xf32>
    %c0_3 = arith.constant 0 : index
    %c0_4 = arith.constant 0 : index
    %9 = vector.load %arg3[%c0_3, %c0_4] : memref<512x128xf32, #tpu.memory_space<vmem>>, vector<512x128xf32>
    %cst_5 = arith.constant dense<0.000000e+00> : vector<128x128xf32>
    %10 = tpu.matmul %8, %9, %cst_5 {dimension_numbers = #tpu.dot_dimension_numbers<[1], [0], [0], [1], [0, 0, 1, 1], [], []>} : vector<128x512xf32>, vector<512x128xf32>, vector<128x128xf32> -> vector<128x128xf32>
    %c0_6 = arith.constant 0 : index
    %c0_7 = arith.constant 0 : index
    %11 = vector.load %arg4[%c0_6, %c0_7] : memref<1x128xf32, #tpu.memory_space<vmem>>, vector<1x128xf32>
    %12 = vector.broadcast %11 : vector<1x128xf32> to vector<128x128xf32>
    %13 = arith.addf %10, %12 : vector<128x128xf32>
    %cst_8 = arith.constant 0.00999999977 : f32
    %14 = vector.broadcast %cst_8 : f32 to vector<128x128xf32>
    %15 = arith.mulf %14, %13 : vector<128x128xf32>
    %16 = arith.maximumf %13, %15 : vector<128x128xf32>
    %c0_9 = arith.constant 0 : index
    %c0_10 = arith.constant 0 : index
    %17 = vector.load %arg5[%c0_9, %c0_10] : memref<128x128xf32, #tpu.memory_space<vmem>>, vector<128x128xf32>
    %cst_11 = arith.constant dense<0.000000e+00> : vector<128x128xf32>
    %18 = tpu.matmul %16, %17, %cst_11 {dimension_numbers = #tpu.dot_dimension_numbers<[1], [0], [0], [1], [0, 0, 1, 1], [], []>} : vector<128x128xf32>, vector<128x128xf32>, vector<128x128xf32> -> vector<128x128xf32>
    %c0_12 = arith.constant 0 : index
    %c0_13 = arith.constant 0 : index
    %19 = vector.load %arg6[%c0_12, %c0_13] : memref<1x128xf32, #tpu.memory_space<vmem>>, vector<1x128xf32>
    %20 = vector.broadcast %19 : vector<1x128xf32> to vector<128x128xf32>
    %21 = arith.addf %18, %20 : vector<128x128xf32>
    %cst_14 = arith.constant 0.00999999977 : f32
    %22 = vector.broadcast %cst_14 : f32 to vector<128x128xf32>
    %23 = arith.mulf %22, %21 : vector<128x128xf32>
    %24 = arith.maximumf %21, %23 : vector<128x128xf32>
    %c0_15 = arith.constant 0 : index
    %c0_16 = arith.constant 0 : index
    %25 = vector.load %arg7[%c0_15, %c0_16] : memref<128x128xf32, #tpu.memory_space<vmem>>, vector<128x128xf32>
    %cst_17 = arith.constant dense<0.000000e+00> : vector<128x128xf32>
    %26 = tpu.matmul %24, %25, %cst_17 {dimension_numbers = #tpu.dot_dimension_numbers<[1], [0], [0], [1], [0, 0, 1, 1], [], []>} : vector<128x128xf32>, vector<128x128xf32>, vector<128x128xf32> -> vector<128x128xf32>
    %c0_18 = arith.constant 0 : index
    %c0_19 = arith.constant 0 : index
    %27 = vector.load %arg8[%c0_18, %c0_19] : memref<1x128xf32, #tpu.memory_space<vmem>>, vector<1x128xf32>
    %28 = vector.broadcast %27 : vector<1x128xf32> to vector<128x128xf32>
    %29 = arith.addf %26, %28 : vector<128x128xf32>
    %c0_20 = arith.constant 0 : index
    %c0_21 = arith.constant 0 : index
    %30 = vector.load %arg9[%c0_20, %c0_21] : memref<128x128xf32, #tpu.memory_space<vmem>>, vector<128x128xf32>
    tpu.vector_store %arg9[%c0_20, %c0_21], %29 {strides = array<i32>} : memref<128x128xf32, #tpu.memory_space<vmem>>, vector<128x128xf32>,
    return
  }
  func.func @transform_0(%arg0: i32) -> (i32, i32) {
    %c0_i32 = arith.constant 0 : i32
    %c0_i32_0 = arith.constant 0 : i32
    return %arg0, %c0_i32 : i32, i32
  }
  func.func @transform_1(%arg0: i32) -> (i32, i32) {
    %c0_i32 = arith.constant 0 : i32
    %c0_i32_0 = arith.constant 0 : i32
    %c0_i32_1 = arith.constant 0 : i32
    return %c0_i32, %c0_i32_0 : i32, i32
  }
  func.func @transform_2(%arg0: i32) -> (i32, i32) {
    %c0_i32 = arith.constant 0 : i32
    %c0_i32_0 = arith.constant 0 : i32
    %c0_i32_1 = arith.constant 0 : i32
    return %c0_i32, %c0_i32_0 : i32, i32
  }
  func.func @transform_3(%arg0: i32) -> (i32, i32) {
    %c0_i32 = arith.constant 0 : i32
    %c0_i32_0 = arith.constant 0 : i32
    %c0_i32_1 = arith.constant 0 : i32
    return %c0_i32, %c0_i32_0 : i32, i32
  }
  func.func @transform_4(%arg0: i32) -> (i32, i32) {
    %c0_i32 = arith.constant 0 : i32
    %c0_i32_0 = arith.constant 0 : i32
    %c0_i32_1 = arith.constant 0 : i32
    return %c0_i32, %c0_i32_0 : i32, i32
  }
  func.func @transform_5(%arg0: i32) -> (i32, i32) {
    %c0_i32 = arith.constant 0 : i32
    %c0_i32_0 = arith.constant 0 : i32
    %c0_i32_1 = arith.constant 0 : i32
    return %c0_i32, %c0_i32_0 : i32, i32
  }
  func.func @transform_6(%arg0: i32) -> (i32, i32) {
    %c0_i32 = arith.constant 0 : i32
    %c0_i32_0 = arith.constant 0 : i32
    %c0_i32_1 = arith.constant 0 : i32
    return %c0_i32, %c0_i32_0 : i32, i32
  }
  func.func @transform_7(%arg0: i32) -> (i32, i32) {
    %c0_i32 = arith.constant 0 : i32
    %c0_i32_0 = arith.constant 0 : i32
    %c0_i32_1 = arith.constant 0 : i32
    return %c0_i32, %c0_i32_0 : i32, i32
  }
  func.func @transform_8(%arg0: i32) -> (i32, i32) {
    %c0_i32 = arith.constant 0 : i32
    %c0_i32_0 = arith.constant 0 : i32
    return %arg0, %c0_i32 : i32, i32
  }
}

</mosaic_0001>

<bundles_post_ra>
// kernel: tpu_custom_call.1
= control target key start
LH: loop header
LB: loop body
LE: loop exit
PB: predicated region body
PF: predicated region fallthrough
CT: control target
= control target key end

     0   :  { %13 = vsyncpa [#allocation3], 0  ;;  %s2964_s0 = inlined_call_operand.vmem [shape: s32[384,1], index: 0, kind: input, shape index: {}]   ;;  %s2965_s1 = inlined_call_operand.hbm [shape: f32[128,512], index: 1, kind: input, shape index: {}]   ;;  %s2966_s2 = inlined_call_operand.hbm [shape: f32[512,128], index: 2, kind: input, shape index: {}]   ;;  %s2967_s3 = inlined_call_operand.vmem [shape: f32[1,128], index: 3, kind: input, shape index: {}]   ;;  %s2968_s4 = inlined_call_operand.vmem [shape: f32[128,128], index: 4, kind: input, shape index: {}]   ;;  %s2969_s5 = inlined_call_operand.vmem [shape: f32[1,128], index: 5, kind: input, shape index: {}]   ;;  %s2970_s6 = inlined_call_operand.vmem [shape: f32[128,128], index: 6, kind: input, shape index: {}]   ;;  %s2971_s7 = inlined_call_operand.vmem [shape: f32[1,128], index: 7, kind: input, shape index: {}]   ;;  %s2972_s8 = inlined_call_operand.hbm [shape: f32[384,128], index: 8, kind: output, shape index: {}]  }
   0x1   :  { %14 = vsyncpa [#allocation6], 0 }
   0x2   :  { %15 = vsyncpa [#allocation4], 0 }
   0x3   :  { %17 = vsyncpa [#allocation4 + $0x1], 0  ;;  %s2558_s27 = smov 0   ;;  %s2560_s28 = smov 0  }
   0x4   :  { %s2562_s29 = smov 0   ;;  %s2564_s30 = smov 0  }
   0x5 LB: > { %s2579_s9 = sadd.s32 4294967295, %s2499_s30   ;;  %s1776_s10 = sadd.s32 4294967294, %s2499_s30   ;;  %s2499_s30 = sphi %s2564_s30, %s2986_s30   ;;  %s2495_s29 = sphi %s2562_s29, %s2985_s29   ;;  %s2491_s28 = sphi %s2560_s28, %s2984_s28   ;;  %s2487_s27 = sphi %s2558_s27, %s2983_s27  }
   0x6   : > { %s2583_s11 = sadd.s32 1, %s2499_s30   ;;  %s203_s12 = sadd.s32 1, %s2495_s29 }
   0x7   : > { %s200_s13 = ssub.s32 %s2499_s30, %s2583_s11  ;;  %p213_p0 = scmp.ne.s32.totalorder %s2495_s29, %s2491_s28 }
   0x8   : > { %p201_p1 = scmp.eq.s32.totalorder %s200_s13, 0  ;;  %p214_p2 = scmp.eq.s32.totalorder %s2579_s9, 2 }
   0x9   : > { %p219_p3 = scmp.ne.s32.totalorder %s2491_s28, %s2487_s27  ;;  %p220_p4 = scmp.eq.s32.totalorder %s1776_s10, 2 }
   0xa   : > { %s2594_s14 = scalar_select %p201_p1, %s2495_s29, %s203_s12  }
   0xb   : > { %p2596_p5 = por %p214_p2, %p213_p0  ;;  %p2600_p6 = por %p220_p4, %p219_p3 }
   0xc   : > { %p1777_p7 = scmp.ge.s32.totalorder %s2499_s30, 1  ;;  %p227_p8 = scmp.lt.s32.totalorder %s2499_s30, 4 }
   0xd   : > { %s2975_s16 = scalar_select %p2600_p6, 1, 0 }
   0xe   : > { %p2973_p9 = scmp.eq.s32.totalorder %s2579_s9, 0  ;;  %p2607_p10 = pnand %p1777_p7, %p227_p8 }
   0xf   : > { %s2501_s18 = smov [#allocation2]   ;;  %s2502_s21 = smov [#allocation5]  }
  0x10   : > { %s239_s19 = sshll.u32 %s2501_s18, 4  ;;  %p2190_p11 = pneg %p2607_p10  ;;  %s240_s19 = int_to_ptr.vmem [resolvable:$true] %s239_s19 }
  0x11   : > { %s252_s22 = sshll.u32 %s2502_s21, 4  ;;  %s2390_s23 = scalar_lea.vmem %s240_s19, 8192  ;;  %s253_s22 = int_to_ptr.vmem [resolvable:$true] %s252_s22 }
  0x12   : > { %p2615_p12 = pnand %p2973_p9, %p2190_p11  ;;  %p2391_p0 = scmp.ne.s32.totalorder %s240_s19, %s2390_s23 }
  0x13   : > { %p2398_p3 = scmp.lt.s32.totalorder %s240_s19, %s240_s19  ;;  %p2399_p4 = scmp.lt.s32.totalorder %s2390_s23, %s2390_s23 }
  0x14   : > { %p2381_p13 = pneg %p2615_p12 }
  0x15   : > { %p2400_p7 = por %p2399_p4, %p2398_p3 }
  0x16   : > { %p2393_p1 = pnand %p2391_p0, %p2381_p13 }
  0x18   : > { %p2394_p2 = pneg %p2393_p1 }
  0x1a   : > { %p2401_p8 = pnand %p2400_p7, %p2394_p2 }
  0x1c   : > { %2404 = shalt.err (!%p2401_p8)
}
  0x1d   : > { %s2503_s24 = smov 512   ;;  %s2504_s25 = smov 32  }
  0x1e   : > { %2193 = dma.hbm_to_vmem [thread:$0]  (!%p2615_p12), %s2965_s1, 8192, %s240_s19, [#allocation3], %s2503_s24, %s2503_s24, %s2504_s25  }
  0x1f   : > { %s2416_s12 = scalar_lea.vmem %s253_s22, 8192  ;;  %p2424_p9 = scmp.lt.s32.totalorder %s253_s22, %s253_s22 }
  0x20   : > { %p2417_p11 = scmp.ne.s32.totalorder %s253_s22, %s2416_s12  ;;  %p2425_p6 = scmp.lt.s32.totalorder %s2416_s12, %s2416_s12 }
  0x22   : > { %p2419_p0 = pnand %p2417_p11, %p2381_p13  ;;  %p2426_p3 = por %p2425_p6, %p2424_p9 }
  0x24   : > { %p2420_p1 = pneg %p2419_p0 }
  0x26   : > { %p2427_p2 = pnand %p2426_p3, %p2420_p1 }
  0x28   : > { %2430 = shalt.err (!%p2427_p2)
}
  0x29   : > { %s2505_s13 = smov 128   ;;  %s2506_s18 = smov 8  }
  0x2a   : > { %2196 = dma.hbm_to_vmem [thread:$0]  (!%p2615_p12), %s2966_s2, 8192, %s253_s22, [#allocation6], %s2505_s13, %s2505_s13, %s2506_s18  }
  0x2b   : > { %292 = sbr.rel (%p2607_p10) target bundleno = 1072 (0x430), region = 52  ;;  %p2978_p4 = scmp.eq.s32.totalorder (!%p2607_p10), %s2579_s9, 0 }
  0x30   : > { %2474 = dma.done.wait (%p2978_p4), [#allocation3], 8192   ;;  %p2979_p13 = pmov %p2978_p4 }
  0x31   : > { %p2980_p6 = pmov %p2978_p4 }
  0x32   : > { %2476 = vsyncadd (%p2979_p13), [#allocation3], 4294959104 }
  0x33   : > { %2478 = dma.done.wait (%p2980_p6), [#allocation6], 8192   ;;  %p2981_p9 = pmov %p2978_p4 }
  0x34   : > { %s1785_s19 = sshll.u32 %s2579_s9, 4  ;;  %v2507_v0 = vmov 0   ;;  %v2508_v1 = vmov 0.0   ;;  %v512_v8 = vld [vmem:[#allocation2 + $0x1e8] sm:$0xff]  ;;  %v514_v9 = vld [vmem:[#allocation2 + $0x1f8] sm:$0xff]  ;;  %v511_v10 = vld [vmem:[#allocation2 + $0x1e0] sm:$0xff] }
  0x35   : > { %2480 = vsyncadd (%p2981_p9), [#allocation6], 4294959104  ;;  %2250 = vset.pattern.permute.xlu1 %v2507_v0  ;;  %2249 = vset.pattern.permute.xlu0 %v2507_v0  ;;  %p331_p12 = scmp.lt.s32.totalorder %s1785_s19, 47  ;;  %v513_v11 = vld [vmem:[#allocation2 + $0x1f0] sm:$0xff]  ;;  %v508_v12 = vld [vmem:[#allocation2 + $0x1c8] sm:$0xff]  ;;  %s327_s12 = sand.u32 1, %s2491_s28  }
  0x36   : > { %579 = vmatprep.mubr.f32.mxu0 %v2508_v1  ;;  %740 = vmatprep.mubr.f32.mxu1 %v2508_v1  ;;  %v510_v13 = vld [vmem:[#allocation2 + $0x1d8] sm:$0xff]  ;;  %v507_v14 = vld [vmem:[#allocation2 + $0x1c0] sm:$0xff]  ;;  %v509_v15 = vld [vmem:[#allocation2 + $0x1d0] sm:$0xff]  ;;  %s1784_s13 = sshll.u32 %s327_s12, 7  ;;  %s2924_s25 = scalar_lea.sflag [#allocation4], %s327_s12 }
  0x37   : > { %s2988_s19 = smov (!%p331_p12, %s1785_s19), 47  ;;  %515 = vmatprep.subr.mxu0 %v512_v8  ;;  %676 = vmatprep.subr.mxu1 %v514_v9  ;;  %v504_v16 = vld [vmem:[#allocation2 + $0x1a8] sm:$0xff]  ;;  %v506_v17 = vld [vmem:[#allocation2 + $0x1b8] sm:$0xff]  ;;  %v503_v18 = vld [vmem:[#allocation2 + $0x1a0] sm:$0xff]  ;;  %s2895_s23 = scalar_lea.vmem [#allocation7], %s1784_s13 }
  0x38   : > { %s1786_s17 = sshll.u32 %s2988_s19, 3  ;;  %516 = vmatpush1.msra.mxu0 %v511_v10  ;;  %677 = vmatpush1.msra.mxu1 %v513_v11  ;;  %v505_v19 = vld [vmem:[#allocation2 + $0x1b0] sm:$0xff]  ;;  %v500_v22 = vld [vmem:[#allocation2 + $0x188] sm:$0xff]  ;;  %v502_v23 = vld [vmem:[#allocation2 + $0x198] sm:$0xff]  ;;  %s1843_s19 = sshll.u32 %s2579_s9, 11 }
  0x39   : > { %s2653_s24 = scalar_lea.vmem %s2964_s0, %s1786_s17  ;;  %517 = vmatprep.subr.mxu0 %v508_v12  ;;  %678 = vmatprep.subr.mxu1 %v510_v13  ;;  %v499_v24 = vld [vmem:[#allocation2 + $0x180] sm:$0xff]  ;;  %v501_v25 = vld [vmem:[#allocation2 + $0x190] sm:$0xff]  ;;  %v496_v26 = vld [vmem:[#allocation2 + $0x168] sm:$0xff]  ;;  %s1692_s17 = sshll.u32 %s2895_s23, 4  ;;  %s2918_s17 = int_to_ptr.vmem [resolvable:$true] %s1692_s17 }
  0x3a   : > { %v339_v2 = vld [vmem:[%s2653_s24 + $0x10] sm:$0xff]  ;;  %v337_v3 = vld [vmem:[%s2653_s24] sm:$0xff]  ;;  %v340_v4 = vld [vmem:[%s2653_s24 + $0x18] sm:$0xff]  ;;  %518 = vmatpush1.msra.mxu0 %v507_v14  ;;  %679 = vmatpush1.msra.mxu1 %v509_v15  ;;  %s2431_s9 = scalar_lea.vmem %s2918_s17, 2048  ;;  %s2510_s26 = smov [#allocation7]  }
  0x3b   : > { %362 = vperm.xlu1 %2250, %v339_v2   ;;  %356 = vperm.xlu0 %2249, %v337_v3   ;;  %v338_v5 = vld [vmem:[%s2653_s24 + $0x8] sm:$0xff]  ;;  %v341_v7 = vld [vmem:[%s2653_s24 + $0x20] sm:$0xff]  ;;  %v344_v20 = vld [vmem:[%s2653_s24 + $0x38] sm:$0xff]  ;;  %p2432_p10 = scmp.ne.s32.totalorder %s2918_s17, %s2431_s9  ;;  %s2435_s10 = sshll.u32 %s2510_s26, 4  ;;  %s2436_s10 = int_to_ptr.vmem [resolvable:$false] %s2435_s10 }
  0x3c   : > { %v342_v6 = vld [vmem:[%s2653_s24 + $0x28] sm:$0xff]  ;;  %v343_v21 = vld [vmem:[%s2653_s24 + $0x30] sm:$0xff]  ;;  %519 = vmatprep.subr.mxu0 %v504_v16  ;;  %680 = vmatprep.subr.mxu1 %v506_v17  ;;  %v498_v27 = vld [vmem:[#allocation2 + $0x178] sm:$0xff]  ;;  %s2437_s13 = scalar_lea.vmem %s2436_s10, 4096  ;;  %p2438_p11 = scmp.lt.s32.totalorder %s2918_s17, %s2436_s10 }
  0x3d   : > { %520 = vmatpush1.msra.mxu0 %v503_v18  ;;  %681 = vmatpush1.msra.mxu1 %v505_v19  ;;  %v346_v28 = vld [vmem:[%s2653_s24 + $0x48] sm:$0xff]  ;;  %v345_v29 = vld [vmem:[%s2653_s24 + $0x40] sm:$0xff]  ;;  %v497_v31 = vld [vmem:[#allocation2 + $0x170] sm:$0xff]  ;;  %p2433_p7 = pnand %p2432_p10, %p2596_p5  ;;  %p2439_p0 = scmp.lt.s32.totalorder %s2437_s13, %s2431_s9 }
  0x3e   : > { %521 = vmatprep.subr.mxu0 %v500_v22  ;;  %682 = vmatprep.subr.mxu1 %v502_v23  ;;  %v495_v30 = vld [vmem:[#allocation2 + $0x160] sm:$0xff]  ;;  %v492_v32 = vld [vmem:[#allocation2 + $0x148] sm:$0xff]  ;;  %v494_v33 = vld [vmem:[#allocation2 + $0x158] sm:$0xff] }
  0x3f   : > { %365 = vperm.xlu1 %2250, %v340_v4   ;;  %359 = vperm.xlu0 %2249, %v338_v5   ;;  %v491_v34 = vld [vmem:[#allocation2 + $0x140] sm:$0xff]  ;;  %v493_v35 = vld [vmem:[#allocation2 + $0x150] sm:$0xff]  ;;  %v348_v36 = vld [vmem:[%s2653_s24 + $0x58] sm:$0xff]  ;;  %p2434_p8 = pneg %p2433_p7  ;;  %p2440_p1 = por %p2439_p0, %p2438_p11 }
  0x40   : > { %522 = vmatpush1.msra.mxu0 %v499_v24  ;;  %683 = vmatpush1.msra.mxu1 %v501_v25  ;;  %v347_v37 = vld [vmem:[%s2653_s24 + $0x50] sm:$0xff]  ;;  %v488_v38 = vld [vmem:[#allocation2 + $0x128] sm:$0xff]  ;;  %v490_v39 = vld [vmem:[#allocation2 + $0x138] sm:$0xff] }
  0x41   : > { %523 = vmatprep.subr.mxu0 %v496_v26  ;;  %684 = vmatprep.subr.mxu1 %v498_v27  ;;  %v487_v40 = vld [vmem:[#allocation2 + $0x120] sm:$0xff]  ;;  %v489_v41 = vld [vmem:[#allocation2 + $0x130] sm:$0xff]  ;;  %v484_v42 = vld [vmem:[#allocation2 + $0x108] sm:$0xff]  ;;  %v2509_v26 = vmov 1.0   ;;  %p2441_p3 = pnand %p2440_p1, %p2434_p8 }
  0x42   : > { %524 = vmatpush1.msra.mxu0 %v495_v30  ;;  %685 = vmatpush1.msra.mxu1 %v497_v31  ;;  %v486_v43 = vld [vmem:[#allocation2 + $0x118] sm:$0xff]  ;;  %v350_v44 = vld [vmem:[%s2653_s24 + $0x68] sm:$0xff]  ;;  %v349_v45 = vld [vmem:[%s2653_s24 + $0x60] sm:$0xff] }
  0x43   : > { %371 = vperm.xlu1 %2250, %v342_v6   ;;  %368 = vperm.xlu0 %2249, %v341_v7   ;;  %v483_v46 = vld [vmem:[#allocation2 + $0x100] sm:$0xff]  ;;  %v485_v47 = vld [vmem:[#allocation2 + $0x110] sm:$0xff]  ;;  %v480_v48 = vld [vmem:[#allocation2 + $0xe8] sm:$0xff] }
  0x44   : > { %525 = vmatprep.subr.mxu0 %v492_v32  ;;  %686 = vmatprep.subr.mxu1 %v494_v33  ;;  %v482_v49 = vld [vmem:[#allocation2 + $0xf8] sm:$0xff]  ;;  %v479_v50 = vld [vmem:[#allocation2 + $0xe0] sm:$0xff]  ;;  %v481_v51 = vld [vmem:[#allocation2 + $0xf0] sm:$0xff] }
  0x45   : > { %526 = vmatpush1.msra.mxu0 %v491_v34  ;;  %687 = vmatpush1.msra.mxu1 %v493_v35  ;;  %v352_v52 = vld [vmem:[%s2653_s24 + $0x78] sm:$0xff]  ;;  %v351_v53 = vld [vmem:[%s2653_s24 + $0x70] sm:$0xff]  ;;  %v476_v54 = vld [vmem:[#allocation2 + $0xc8] sm:$0xff]  ;;  %s2916_s24 = scalar_lea.hbm %s2972_s8, %s1843_s19 }
  0x46   : > { %527 = vmatprep.subr.mxu0 %v488_v38  ;;  %688 = vmatprep.subr.mxu1 %v490_v39  ;;  %v478_v55 = vld [vmem:[#allocation2 + $0xd8] sm:$0xff]  ;;  %v475_v56 = vld [vmem:[#allocation2 + $0xc0] sm:$0xff]  ;;  %v477_v57 = vld [vmem:[#allocation2 + $0xd0] sm:$0xff] }
  0x47   : > { %377 = vperm.xlu1 %2250, %v344_v20   ;;  %374 = vperm.xlu0 %2249, %v343_v21   ;;  %v472_v58 = vld [vmem:[#allocation2 + $0xa8] sm:$0xff]  ;;  %v474_v59 = vld [vmem:[#allocation2 + $0xb8] sm:$0xff]  ;;  %v471_v60 = vld [vmem:[#allocation2 + $0xa0] sm:$0xff]  ;;  %v353_v21 = vlaneseq }
  0x48   : > { %528 = vmatpush1.msra.mxu0 %v487_v40  ;;  %689 = vmatpush1.msra.mxu1 %v489_v41  ;;  %v473_v61 = vld [vmem:[#allocation2 + $0xb0] sm:$0xff]  ;;  %v468_v62 = vld [vmem:[#allocation2 + $0x88] sm:$0xff]  ;;  %v470_v63 = vld [vmem:[#allocation2 + $0x98] sm:$0xff] }
  0x49   : > { %529 = vmatprep.subr.mxu0 %v484_v42  ;;  %690 = vmatprep.subr.mxu1 %v486_v43  ;;  %v467_v0 = vld [vmem:[#allocation2 + $0x80] sm:$0xff]  ;;  %v469_v2 = vld [vmem:[#allocation2 + $0x90] sm:$0xff]  ;;  %v464_v3 = vld [vmem:[#allocation2 + $0x68] sm:$0xff]  ;;  %v2671_v22 = vand.u32 127, %v353_v21 }
  0x4a   : > { %530 = vmatpush1.msra.mxu0 %v483_v46  ;;  %691 = vmatpush1.msra.mxu1 %v485_v47  ;;  %v466_v4 = vld [vmem:[#allocation2 + $0x78] sm:$0xff]  ;;  %v463_v5 = vld [vmem:[#allocation2 + $0x60] sm:$0xff]  ;;  %v465_v6 = vld [vmem:[#allocation2 + $0x70] sm:$0xff] }
  0x4b   : > { %383 = vperm.xlu1 %2250, %v346_v28   ;;  %380 = vperm.xlu0 %2249, %v345_v29   ;;  %v460_v7 = vld [vmem:[#allocation2 + $0x48] sm:$0xff]  ;;  %v462_v8 = vld [vmem:[#allocation2 + $0x58] sm:$0xff]  ;;  %v459_v9 = vld [vmem:[#allocation2 + $0x40] sm:$0xff] }
  0x4c   : > { %531 = vmatprep.subr.mxu0 %v480_v48  ;;  %692 = vmatprep.subr.mxu1 %v482_v49  ;;  %v461_v10 = vld [vmem:[#allocation2 + $0x50] sm:$0xff]  ;;  %v456_v11 = vld [vmem:[#allocation2 + $0x28] sm:$0xff]  ;;  %v458_v12 = vld [vmem:[#allocation2 + $0x38] sm:$0xff] }
  0x4d   : > { %532 = vmatpush1.msra.mxu0 %v479_v50  ;;  %693 = vmatpush1.msra.mxu1 %v481_v51  ;;  %v455_v13 = vld [vmem:[#allocation2 + $0x20] sm:$0xff]  ;;  %v457_v14 = vld [vmem:[#allocation2 + $0x30] sm:$0xff]  ;;  %v452_v15 = vld [vmem:[#allocation2 + $0x8] sm:$0xff] }
  0x4e   : > { %533 = vmatprep.subr.mxu0 %v476_v54  ;;  %694 = vmatprep.subr.mxu1 %v478_v55  ;;  %v454_v16 = vld [vmem:[#allocation2 + $0x18] sm:$0xff]  ;;  %v451_v17 = vld [vmem:[#allocation2] sm:$0xff]  ;;  %v453_v18 = vld [vmem:[#allocation2 + $0x10] sm:$0xff] }
  0x4f   : > { %389 = vperm.xlu1 %2250, %v348_v36   ;;  %386 = vperm.xlu0 %2249, %v347_v37   ;;  %v932_v19 = vld [vmem:[#allocation5 + $0xf8] sm:$0xff]  ;;  %v931_v27 = vld [vmem:[#allocation5 + $0xf0] sm:$0xff]  ;;  %v930_v33 = vld [vmem:[#allocation5 + $0xe8] sm:$0xff] }
  0x50   : > { %534 = vmatpush1.msra.mxu0 %v475_v56  ;;  %695 = vmatpush1.msra.mxu1 %v477_v57  ;;  %v964_v20 = vld [vmem:[#allocation5 + $0x1f8] sm:$0xff]  ;;  %v963_v28 = vld [vmem:[#allocation5 + $0x1f0] sm:$0xff]  ;;  %v962_v34 = vld [vmem:[#allocation5 + $0x1e8] sm:$0xff] }
  0x51   : > { %535 = vmatprep.subr.mxu0 %v472_v58  ;;  %696 = vmatprep.subr.mxu1 %v474_v59  ;;  %v916_v24 = vld [vmem:[#allocation5 + $0x78] sm:$0xff]  ;;  %v915_v30 = vld [vmem:[#allocation5 + $0x70] sm:$0xff]  ;;  %v914_v35 = vld [vmem:[#allocation5 + $0x68] sm:$0xff] }
  0x52   : > { %536 = vmatpush1.msra.mxu0 %v471_v60  ;;  %697 = vmatpush1.msra.mxu1 %v473_v61  ;;  %v948_v25 = vld [vmem:[#allocation5 + $0x178] sm:$0xff]  ;;  %v947_v31 = vld [vmem:[#allocation5 + $0x170] sm:$0xff]  ;;  %v946_v36 = vld [vmem:[#allocation5 + $0x168] sm:$0xff] }
  0x53   : > { %395 = vperm.xlu1 %2250, %v350_v44   ;;  %392 = vperm.xlu0 %2249, %v349_v45   ;;  %v929_v37 = vld [vmem:[#allocation5 + $0xe0] sm:$0xff]  ;;  %v928_v43 = vld [vmem:[#allocation5 + $0xd8] sm:$0xff]  ;;  %v927_v48 = vld [vmem:[#allocation5 + $0xd0] sm:$0xff] }
  0x54   : > { %537 = vmatprep.subr.mxu0 %v468_v62  ;;  %698 = vmatprep.subr.mxu1 %v470_v63  ;;  %v961_v38 = vld [vmem:[#allocation5 + $0x1e0] sm:$0xff]  ;;  %v960_v44 = vld [vmem:[#allocation5 + $0x1d8] sm:$0xff]  ;;  %v959_v49 = vld [vmem:[#allocation5 + $0x1d0] sm:$0xff] }
  0x55   : > { %538 = vmatpush1.msra.mxu0 %v467_v0  ;;  %699 = vmatpush1.msra.mxu1 %v469_v2  ;;  %v913_v40 = vld [vmem:[#allocation5 + $0x60] sm:$0xff]  ;;  %v912_v45 = vld [vmem:[#allocation5 + $0x58] sm:$0xff]  ;;  %v911_v50 = vld [vmem:[#allocation5 + $0x50] sm:$0xff] }
  0x56   : > { %539 = vmatprep.subr.mxu0 %v464_v3  ;;  %700 = vmatprep.subr.mxu1 %v466_v4  ;;  %v945_v41 = vld [vmem:[#allocation5 + $0x160] sm:$0xff]  ;;  %v944_v46 = vld [vmem:[#allocation5 + $0x158] sm:$0xff]  ;;  %v943_v51 = vld [vmem:[#allocation5 + $0x150] sm:$0xff] }
  0x57   : > { %401 = vperm.xlu1 %2250, %v352_v52   ;;  %398 = vperm.xlu0 %2249, %v351_v53   ;;  %v926_v53 = vld [vmem:[#allocation5 + $0xc8] sm:$0xff]  ;;  %v925_v58 = vld [vmem:[#allocation5 + $0xc0] sm:$0xff]  ;;  %v924_v63 = vld [vmem:[#allocation5 + $0xb8] sm:$0xff] }
  0x58   : > { %540 = vmatpush1.msra.mxu0 %v463_v5  ;;  %701 = vmatpush1.msra.mxu1 %v465_v6  ;;  %v958_v54 = vld [vmem:[#allocation5 + $0x1c8] sm:$0xff]  ;;  %v957_v59 = vld [vmem:[#allocation5 + $0x1c0] sm:$0xff]  ;;  %v956_v0 = vld [vmem:[#allocation5 + $0x1b8] sm:$0xff] }
  0x59   : > { %541 = vmatprep.subr.mxu0 %v460_v7  ;;  %702 = vmatprep.subr.mxu1 %v462_v8  ;;  %v910_v55 = vld [vmem:[#allocation5 + $0x48] sm:$0xff]  ;;  %v909_v60 = vld [vmem:[#allocation5 + $0x40] sm:$0xff]  ;;  %v908_v2 = vld [vmem:[#allocation5 + $0x38] sm:$0xff] }
  0x5a   : > { %542 = vmatpush1.msra.mxu0 %v459_v9  ;;  %703 = vmatpush1.msra.mxu1 %v461_v10  ;;  %v942_v56 = vld [vmem:[#allocation5 + $0x148] sm:$0xff]  ;;  %v941_v61 = vld [vmem:[#allocation5 + $0x140] sm:$0xff]  ;;  %v940_v3 = vld [vmem:[#allocation5 + $0x138] sm:$0xff] }
  0x5b   : > { %543 = vmatprep.subr.mxu0 %v456_v11  ;;  %704 = vmatprep.subr.mxu1 %v458_v12  ;;  %v923_v5 = vld [vmem:[#allocation5 + $0xb0] sm:$0xff]  ;;  %v922_v10 = vld [vmem:[#allocation5 + $0xa8] sm:$0xff] }
  0x5c   : > { %544 = vmatpush1.msra.mxu0 %v455_v13  ;;  %705 = vmatpush1.msra.mxu1 %v457_v14  ;;  %v955_v6 = vld [vmem:[#allocation5 + $0x1b0] sm:$0xff]  ;;  %v954_v11 = vld [vmem:[#allocation5 + $0x1a8] sm:$0xff] }
  0x5d   : > { %545 = vmatprep.subr.mxu0 %v452_v15  ;;  %706 = vmatprep.subr.mxu1 %v454_v16  ;;  %v907_v7 = vld [vmem:[#allocation5 + $0x30] sm:$0xff]  ;;  %v906_v12 = vld [vmem:[#allocation5 + $0x28] sm:$0xff]  ;;  %v921_v15 = vld [vmem:[#allocation5 + $0xa0] sm:$0xff] }
  0x5e   : > { %546 = vmatpush1.msra.mxu0 %v451_v17  ;;  %707 = vmatpush1.msra.mxu1 %v453_v18  ;;  %v939_v8 = vld [vmem:[#allocation5 + $0x130] sm:$0xff]  ;;  %v938_v13 = vld [vmem:[#allocation5 + $0x128] sm:$0xff]  ;;  %v953_v16 = vld [vmem:[#allocation5 + $0x1a0] sm:$0xff] }
  0x5f   : > { %1844 = vmatprep.subr.mxu0 %v932_v19  ;;  %1924 = vmatprep.subr.mxu1 %v964_v20  ;;  %v905_v17 = vld [vmem:[#allocation5 + $0x20] sm:$0xff] }
  0xb6   : > { %v357_v23 = vpop.permute.xlu0 %356  ;;  %v363_v32 = vpop.permute.xlu1 %362 }
  0xb7   : > { %vm403_vm0 = vcmp.eq.s32.totalorder %v2671_v22, %v357_v23  ;;  %vm405_vm2 = vcmp.eq.s32.totalorder %v2671_v22, %v363_v32  ;;  %v937_v23 = vld [vmem:[#allocation5 + $0x120] sm:$0xff]  ;;  %v950_v32 = vld [vmem:[#allocation5 + $0x188] sm:$0xff] }
  0xb8   : > { %1803 = vmatmul.mubr.msk.f32.vlgmr.msra.gmra.mxu0 %vm403_vm0, %v2509_v26  ;;  %1819 = vmatmul.mubr.msk.f32.vlgmr.msra.gmra.mxu1 %vm403_vm0, %v2509_v26 }
  0xb9   : > { %585 = vmatprep.mubr.f32.mxu0 %v2508_v1  ;;  %746 = vmatprep.mubr.f32.mxu1 %v2508_v1 }
  0xba   : > { %v360_v29 = vpop.permute.xlu0 %359  ;;  %1845 = vmatpush3.msra.mxu0 %v916_v24  ;;  %1925 = vmatpush3.msra.mxu1 %v948_v25  ;;  %v366_v39 = vpop.permute.xlu1 %365  ;;  %v920_v24 = vld [vmem:[#allocation5 + $0x98] sm:$0xff] }
  0xbb   : > { %vm404_vm1 = vcmp.eq.s32.totalorder %v2671_v22, %v360_v29  ;;  %1846 = vmatprep.subr.mxu0 %v931_v27  ;;  %1926 = vmatprep.subr.mxu1 %v963_v28  ;;  %vm406_vm3 = vcmp.eq.s32.totalorder %v2671_v22, %v366_v39  ;;  %v904_v25 = vld [vmem:[#allocation5 + $0x18] sm:$0xff]  ;;  %v919_v29 = vld [vmem:[#allocation5 + $0x90] sm:$0xff] }
  0xbc   : > { %1804 = vmatmul.mubr.msk.f32.gmra.mxu0 %vm404_vm1, %v2509_v26  ;;  %1820 = vmatmul.mubr.msk.f32.gmra.mxu1 %vm404_vm1, %v2509_v26  ;;  %v952_v27 = vld [vmem:[#allocation5 + $0x198] sm:$0xff] }
  0xbd   : > { %591 = vmatprep.mubr.f32.mxu0 %v2508_v1  ;;  %752 = vmatprep.mubr.f32.mxu1 %v2508_v1  ;;  %v936_v28 = vld [vmem:[#allocation5 + $0x118] sm:$0xff] }
  0xbe   : > { %1847 = vmatpush3.msra.mxu0 %v915_v30  ;;  %1927 = vmatpush3.msra.mxu1 %v947_v31  ;;  %v369_v42 = vpop.permute.xlu0 %368  ;;  %v372_v47 = vpop.permute.xlu1 %371  ;;  %v903_v30 = vld [vmem:[#allocation5 + $0x10] sm:$0xff]  ;;  %v918_v31 = vld [vmem:[#allocation5 + $0x88] sm:$0xff] }
  0xbf   : > { %1848 = vmatprep.subr.mxu0 %v930_v33  ;;  %1928 = vmatprep.subr.mxu1 %v962_v34  ;;  %vm407_vm4 = vcmp.eq.s32.totalorder %v2671_v22, %v369_v42  ;;  %vm408_vm5 = vcmp.eq.s32.totalorder %v2671_v22, %v372_v47  ;;  %v934_v33 = vld [vmem:[#allocation5 + $0x108] sm:$0xff]  ;;  %v917_v34 = vld [vmem:[#allocation5 + $0x80] sm:$0xff] }
  0xc0   : > { %1805 = vmatmul.mubr.msk.f32.gmra.mxu0 %vm405_vm2, %v2509_v26  ;;  %1821 = vmatmul.mubr.msk.f32.gmra.mxu1 %vm405_vm2, %v2509_v26 }
  0xc1   : > { %597 = vmatprep.mubr.f32.mxu0 %v2508_v1  ;;  %758 = vmatprep.mubr.f32.mxu1 %v2508_v1 }
  0xc2   : > { %1849 = vmatpush3.msra.mxu0 %v914_v35  ;;  %1929 = vmatpush3.msra.mxu1 %v946_v36  ;;  %v375_v52 = vpop.permute.xlu0 %374  ;;  %v378_v57 = vpop.permute.xlu1 %377  ;;  %v901_v35 = vld [vmem:[#allocation5] sm:$0xff] }
  0xc3   : > { %1850 = vmatprep.subr.mxu0 %v929_v37  ;;  %1930 = vmatprep.subr.mxu1 %v961_v38  ;;  %vm409_vm6 = vcmp.eq.s32.totalorder %v2671_v22, %v375_v52  ;;  %vm410_vm7 = vcmp.eq.s32.totalorder %v2671_v22, %v378_v57  ;;  %v949_v36 = vld [vmem:[#allocation5 + $0x180] sm:$0xff]  ;;  %v1309_v38 = vld [vmem:[%s2968_s4 + $0x78] sm:$0xff] }
  0xc4   : > { %1806 = vmatmul.mubr.msk.f32.gmra.mxu0 %vm406_vm3, %v2509_v26  ;;  %1822 = vmatmul.mubr.msk.f32.gmra.mxu1 %vm406_vm3, %v2509_v26  ;;  %v933_v37 = vld [vmem:[#allocation5 + $0x100] sm:$0xff] }
  0xc5   : > { %603 = vmatprep.mubr.f32.mxu0 %v2508_v1  ;;  %764 = vmatprep.mubr.f32.mxu1 %v2508_v1 }
  0xc6   : > { %1851 = vmatpush3.msra.mxu0 %v913_v40  ;;  %1931 = vmatpush3.msra.mxu1 %v945_v41  ;;  %v381_v62 = vpop.permute.xlu0 %380  ;;  %v384_v4 = vpop.permute.xlu1 %383 }
  0xc7   : > { %1852 = vmatprep.subr.mxu0 %v928_v43  ;;  %1932 = vmatprep.subr.mxu1 %v960_v44  ;;  %vm411_vm8 = vcmp.eq.s32.totalorder %v2671_v22, %v381_v62  ;;  %vm412_vm9 = vcmp.eq.s32.totalorder %v2671_v22, %v384_v4 }
  0xc8   : > { %1807 = vmatmul.mubr.msk.f32.gmra.mxu0 %vm407_vm4, %v2509_v26  ;;  %1823 = vmatmul.mubr.msk.f32.gmra.mxu1 %vm407_vm4, %v2509_v26 }
  0xc9   : > { %609 = vmatprep.mubr.f32.mxu0 %v2508_v1  ;;  %770 = vmatprep.mubr.f32.mxu1 %v2508_v1 }
  0xca   : > { %1853 = vmatpush3.msra.mxu0 %v912_v45  ;;  %1933 = vmatpush3.msra.mxu1 %v944_v46  ;;  %v387_v9 = vpop.permute.xlu0 %386  ;;  %v390_v14 = vpop.permute.xlu1 %389 }
  0xcb   : > { %1854 = vmatprep.subr.mxu0 %v927_v48  ;;  %1934 = vmatprep.subr.mxu1 %v959_v49  ;;  %vm413_vm10 = vcmp.eq.s32.totalorder %v2671_v22, %v387_v9  ;;  %vm414_vm11 = vcmp.eq.s32.totalorder %v2671_v22, %v390_v14 }
  0xcc   : > { %1808 = vmatmul.mubr.msk.f32.gmra.mxu0 %vm408_vm5, %v2509_v26  ;;  %1824 = vmatmul.mubr.msk.f32.gmra.mxu1 %vm408_vm5, %v2509_v26 }
  0xcd   : > { %615 = vmatprep.mubr.f32.mxu0 %v2508_v1  ;;  %776 = vmatprep.mubr.f32.mxu1 %v2508_v1 }
  0xce   : > { %1855 = vmatpush3.msra.mxu0 %v911_v50  ;;  %1935 = vmatpush3.msra.mxu1 %v943_v51  ;;  %v393_v18 = vpop.permute.xlu0 %392  ;;  %v396_v19 = vpop.permute.xlu1 %395 }
  0xcf   : > { %1856 = vmatprep.subr.mxu0 %v926_v53  ;;  %1936 = vmatprep.subr.mxu1 %v958_v54  ;;  %vm415_vm12 = vcmp.eq.s32.totalorder %v2671_v22, %v393_v18  ;;  %vm416_vm13 = vcmp.eq.s32.totalorder %v2671_v22, %v396_v19 }
  0xd0   : > { %1809 = vmatmul.mubr.msk.f32.gmra.mxu0 %vm409_vm6, %v2509_v26  ;;  %1825 = vmatmul.mubr.msk.f32.gmra.mxu1 %vm409_vm6, %v2509_v26 }
  0xd1   : > { %621 = vmatprep.mubr.f32.mxu0 %v2508_v1  ;;  %782 = vmatprep.mubr.f32.mxu1 %v2508_v1 }
  0xd2   : > { %1857 = vmatpush3.msra.mxu0 %v910_v55  ;;  %1937 = vmatpush3.msra.mxu1 %v942_v56  ;;  %v399_v20 = vpop.permute.xlu0 %398  ;;  %v402_v21 = vpop.permute.xlu1 %401 }
  0xd3   : > { %1858 = vmatprep.subr.mxu0 %v925_v58  ;;  %1938 = vmatprep.subr.mxu1 %v957_v59  ;;  %vm417_vm14 = vcmp.eq.s32.totalorder %v2671_v22, %v399_v20  ;;  %vm418_vm15 = vcmp.eq.s32.totalorder %v2671_v22, %v402_v21  ;;  %v935_v22 = vld [vmem:[#allocation5 + $0x110] sm:$0xff] }
  0xd4   : > { %1810 = vmatmul.mubr.msk.f32.gmra.mxu0 %vm410_vm7, %v2509_v26  ;;  %1826 = vmatmul.mubr.msk.f32.gmra.mxu1 %vm410_vm7, %v2509_v26 }
  0xd5   : > { %627 = vmatprep.mubr.f32.mxu0 %v2508_v1  ;;  %788 = vmatprep.mubr.f32.mxu1 %v2508_v1 }
  0xd6   : > { %1859 = vmatpush3.msra.mxu0 %v909_v60  ;;  %1939 = vmatpush3.msra.mxu1 %v941_v61  ;;  %v1308_v60 = vld [vmem:[%s2968_s4 + $0x70] sm:$0xff] }
  0xd7   : > { %1860 = vmatprep.subr.mxu0 %v924_v63  ;;  %1940 = vmatprep.subr.mxu1 %v956_v0 }
  0xd8   : > { %1811 = vmatmul.mubr.msk.f32.gmra.mxu0 %vm411_vm8, %v2509_v26  ;;  %1827 = vmatmul.mubr.msk.f32.gmra.mxu1 %vm411_vm8, %v2509_v26 }
  0xd9   : > { %633 = vmatprep.mubr.f32.mxu0 %v2508_v1  ;;  %794 = vmatprep.mubr.f32.mxu1 %v2508_v1 }
  0xda   : > { %1861 = vmatpush3.msra.mxu0 %v908_v2  ;;  %1941 = vmatpush3.msra.mxu1 %v940_v3 }
  0xdb   : > { %1862 = vmatprep.subr.mxu0 %v923_v5  ;;  %1942 = vmatprep.subr.mxu1 %v955_v6  ;;  %v1307_v5 = vld [vmem:[%s2968_s4 + $0x68] sm:$0xff] }
  0xdc   : > { %1812 = vmatmul.mubr.msk.f32.gmra.mxu0 %vm412_vm9, %v2509_v26  ;;  %1828 = vmatmul.mubr.msk.f32.gmra.mxu1 %vm412_vm9, %v2509_v26 }
  0xdd   : > { %639 = vmatprep.mubr.f32.mxu0 %v2508_v1  ;;  %800 = vmatprep.mubr.f32.mxu1 %v2508_v1 }
  0xde   : > { %1863 = vmatpush3.msra.mxu0 %v907_v7  ;;  %1943 = vmatpush3.msra.mxu1 %v939_v8 }
  0xdf   : > { %1864 = vmatprep.subr.mxu0 %v922_v10  ;;  %1944 = vmatprep.subr.mxu1 %v954_v11  ;;  %v1306_v10 = vld [vmem:[%s2968_s4 + $0x60] sm:$0xff] }
  0xe0   : > { %1813 = vmatmul.mubr.msk.f32.gmra.mxu0 %vm413_vm10, %v2509_v26  ;;  %1829 = vmatmul.mubr.msk.f32.gmra.mxu1 %vm413_vm10, %v2509_v26 }
  0xe1   : > { %645 = vmatprep.mubr.f32.mxu0 %v2508_v1  ;;  %806 = vmatprep.mubr.f32.mxu1 %v2508_v1 }
  0xe2   : > { %1865 = vmatpush3.msra.mxu0 %v906_v12  ;;  %1945 = vmatpush3.msra.mxu1 %v938_v13 }
  0xe3   : > { %1866 = vmatprep.subr.mxu0 %v921_v15  ;;  %1946 = vmatprep.subr.mxu1 %v953_v16  ;;  %v1305_v16 = vld [vmem:[%s2968_s4 + $0x58] sm:$0xff] }
  0xe4   : > { %1814 = vmatmul.mubr.msk.f32.gmra.mxu0 %vm414_vm11, %v2509_v26  ;;  %1830 = vmatmul.mubr.msk.f32.gmra.mxu1 %vm414_vm11, %v2509_v26 }
  0xe5   : > { %651 = vmatprep.mubr.f32.mxu0 %v2508_v1  ;;  %812 = vmatprep.mubr.f32.mxu1 %v2508_v1 }
  0xe6   : > { %1867 = vmatpush3.msra.mxu0 %v905_v17  ;;  %1947 = vmatpush3.msra.mxu1 %v937_v23 }
  0xe7   : > { %1868 = vmatprep.subr.mxu0 %v920_v24  ;;  %1948 = vmatprep.subr.mxu1 %v952_v27 }
  0xe8   : > { %1815 = vmatmul.mubr.msk.f32.gmra.mxu0 %vm415_vm12, %v2509_v26  ;;  %1831 = vmatmul.mubr.msk.f32.gmra.mxu1 %vm415_vm12, %v2509_v26 }
  0xe9   : > { %657 = vmatprep.mubr.f32.mxu0 %v2508_v1  ;;  %818 = vmatprep.mubr.f32.mxu1 %v2508_v1 }
  0xea   : > { %1869 = vmatpush3.msra.mxu0 %v904_v25  ;;  %1949 = vmatpush3.msra.mxu1 %v936_v28  ;;  %v1304_v25 = vld [vmem:[%s2968_s4 + $0x50] sm:$0xff] }
  0xeb   : > { %1870 = vmatprep.subr.mxu0 %v919_v29 }
  0xec   : > { %1816 = vmatmul.mubr.msk.f32.gmra.mxu0 %vm416_vm13, %v2509_v26  ;;  %1832 = vmatmul.mubr.msk.f32.gmra.mxu1 %vm416_vm13, %v2509_v26 }
  0xed   : > { %663 = vmatprep.mubr.f32.mxu0 %v2508_v1  ;;  %824 = vmatprep.mubr.f32.mxu1 %v2508_v1 }
  0xee   : > { %1871 = vmatpush3.msra.mxu0 %v903_v30 }
  0xef   : > { %1872 = vmatprep.subr.mxu0 %v918_v31 }
  0xf0   : > { %1817 = vmatmul.mubr.msk.f32.gmra.mxu0 %vm417_vm14, %v2509_v26  ;;  %1833 = vmatmul.mubr.msk.f32.gmra.mxu1 %vm417_vm14, %v2509_v26 }
  0xf1   : > { %669 = vmatprep.mubr.f32.mxu0 %v2508_v1  ;;  %830 = vmatprep.mubr.f32.mxu1 %v2508_v1  ;;  %v951_v1 = vld [vmem:[#allocation5 + $0x190] sm:$0xff] }
  0xf2   : > { %1950 = vmatprep.subr.mxu1 %v951_v1  ;;  %v1303_v1 = vld [vmem:[%s2968_s4 + $0x48] sm:$0xff] }
  0xf3   : > { %1951 = vmatpush3.msra.mxu1 %v935_v22 }
  0xf4   : > { %1818 = vmatmul.mubr.msk.f32.gmra.mxu0 %vm418_vm15, %v2509_v26  ;;  %1834 = vmatmul.mubr.msk.f32.gmra.mxu1 %vm418_vm15, %v2509_v26  ;;  %v902_v26 = vld [vmem:[#allocation5 + $0x8] sm:$0xff] }
  0xf5   : > { %1873 = vmatpush3.msra.mxu0 %v902_v26  ;;  %1952 = vmatprep.subr.mxu1 %v950_v32 }
  0xf6   : > { %1953 = vmatpush3.msra.mxu1 %v934_v33  ;;  %1874 = vmatprep.subr.mxu0 %v917_v34  ;;  %v1302_v34 = vld [vmem:[%s2968_s4 + $0x40] sm:$0xff] }
  0xf7   : > { %1875 = vmatpush3.msra.mxu0 %v901_v35  ;;  %1954 = vmatprep.subr.mxu1 %v949_v36 }
  0xf8   : > { %1955 = vmatpush3.msra.mxu1 %v933_v37  ;;  %2068 = vmatprep.subr.mxu0 %v1309_v38 }
 0x178   : > { %v581_v39 = vpop.f32.mrf.mxu0  ;;  %v742_v40 = vpop.f32.mrf.mxu1 }
 0x179   : > { %2251 = vtanh.f32 %v581_v39 }
 0x17a   : > { %v583_v41 = vpop.f32.mrf.mxu0  ;;  %v744_v42 = vpop.f32.mrf.mxu1 }
 0x17b   : > { %2253 = vtanh.f32 %v583_v41 }
 0x17c   : > { %2255 = vtanh.f32 %v744_v42  ;;  %v587_v43 = vpop.f32.mrf.mxu0  ;;  %v748_v44 = vpop.f32.mrf.mxu1 }
 0x17d   : > { %2257 = vtanh.f32 %v742_v40 }
 0x17e   : > { %2259 = vtanh.f32 %v587_v43  ;;  %v589_v45 = vpop.f32.mrf.mxu0  ;;  %v750_v46 = vpop.f32.mrf.mxu1 }
 0x17f   : > { %2261 = vtanh.f32 %v589_v45 }
 0x180   : > { %2263 = vtanh.f32 %v750_v46  ;;  %v593_v47 = vpop.f32.mrf.mxu0  ;;  %v754_v48 = vpop.f32.mrf.mxu1 }
 0x181   : > { %2265 = vtanh.f32 %v748_v44 }
 0x182   : > { %2267 = vtanh.f32 %v593_v47  ;;  %v595_v49 = vpop.f32.mrf.mxu0  ;;  %v756_v50 = vpop.f32.mrf.mxu1 }
 0x183   : > { %2269 = vtanh.f32 %v595_v49 }
 0x184   : > { %2271 = vtanh.f32 %v756_v50  ;;  %v599_v51 = vpop.f32.mrf.mxu0  ;;  %v760_v52 = vpop.f32.mrf.mxu1 }
 0x185   : > { %2273 = vtanh.f32 %v754_v48 }
 0x186   : > { %2275 = vtanh.f32 %v599_v51  ;;  %v601_v53 = vpop.f32.mrf.mxu0  ;;  %v762_v54 = vpop.f32.mrf.mxu1 }
 0x187   : > { %v2252_v55 = vpop.eup %2251  ;;  %2277 = vtanh.f32 %v601_v53 }
 0x188   : > { %v2254_v56 = vpop.eup %2253  ;;  %2279 = vtanh.f32 %v762_v54  ;;  %v605_v57 = vpop.f32.mrf.mxu0 }
 0x189   : > { %v766_v58 = vpop.f32.mrf.mxu1  ;;  %v2256_v59 = vpop.eup %2255  ;;  %2281 = vtanh.f32 %v760_v52  ;;  %1036 = vmatprep.mubr.f32.mxu0 %v2254_v56 }
 0x18a   : > { %v2258_v61 = vpop.eup %2257  ;;  %2283 = vtanh.f32 %v605_v57  ;;  %1181 = vmatprep.mubr.f32.mxu1 %v2256_v59  ;;  %v607_v62 = vpop.f32.mrf.mxu0  ;;  %1037 = vmatmul.mubr.f32.vlgmr.msra.gmra.mxu0 %v2252_v55 }
 0x18b   : > { %v768_v63 = vpop.f32.mrf.mxu1  ;;  %v2260_v0 = vpop.eup %2259  ;;  %2285 = vtanh.f32 %v607_v62  ;;  %1182 = vmatmul.mubr.f32.vlgmr.msra.gmra.mxu1 %v2258_v61  ;;  %2069 = vmatpush3.msra.mxu0 %v1309_v38 }
 0x18c   : > { %v2262_v2 = vpop.eup %2261  ;;  %2287 = vtanh.f32 %v768_v63  ;;  %v611_v3 = vpop.f32.mrf.mxu0  ;;  %2070 = vmatprep.subr.mxu0 %v1308_v60 }
 0x18d   : > { %v772_v4 = vpop.f32.mrf.mxu1  ;;  %v2264_v6 = vpop.eup %2263  ;;  %2289 = vtanh.f32 %v766_v58  ;;  %1041 = vmatprep.mubr.f32.mxu0 %v2262_v2  ;;  %2071 = vmatpush3.msra.mxu0 %v1308_v60 }
 0x18e   : > { %v2266_v7 = vpop.eup %2265  ;;  %2291 = vtanh.f32 %v611_v3  ;;  %1186 = vmatprep.mubr.f32.mxu1 %v2264_v6  ;;  %v613_v8 = vpop.f32.mrf.mxu0  ;;  %1042 = vmatmul.mubr.f32.gmra.mxu0 %v2260_v0 }
 0x18f   : > { %v774_v9 = vpop.f32.mrf.mxu1  ;;  %v2268_v11 = vpop.eup %2267  ;;  %2293 = vtanh.f32 %v613_v8  ;;  %1187 = vmatmul.mubr.f32.gmra.mxu1 %v2266_v7  ;;  %2072 = vmatprep.subr.mxu0 %v1307_v5 }
 0x190   : > { %v2270_v12 = vpop.eup %2269  ;;  %2295 = vtanh.f32 %v774_v9  ;;  %v617_v13 = vpop.f32.mrf.mxu0  ;;  %2073 = vmatpush3.msra.mxu0 %v1307_v5 }
 0x191   : > { %v778_v14 = vpop.f32.mrf.mxu1  ;;  %v2272_v15 = vpop.eup %2271  ;;  %2297 = vtanh.f32 %v772_v4  ;;  %1046 = vmatprep.mubr.f32.mxu0 %v2270_v12  ;;  %2074 = vmatprep.subr.mxu0 %v1306_v10 }
 0x192   : > { %v2274_v17 = vpop.eup %2273  ;;  %2299 = vtanh.f32 %v617_v13  ;;  %1191 = vmatprep.mubr.f32.mxu1 %v2272_v15  ;;  %v619_v18 = vpop.f32.mrf.mxu0  ;;  %1047 = vmatmul.mubr.f32.gmra.mxu0 %v2268_v11 }
 0x193   : > { %v780_v19 = vpop.f32.mrf.mxu1  ;;  %v2276_v20 = vpop.eup %2275  ;;  %2301 = vtanh.f32 %v619_v18  ;;  %1192 = vmatmul.mubr.f32.gmra.mxu1 %v2274_v17  ;;  %2075 = vmatpush3.msra.mxu0 %v1306_v10 }
 0x194   : > { %v2278_v21 = vpop.eup %2277  ;;  %2303 = vtanh.f32 %v780_v19  ;;  %v623_v23 = vpop.f32.mrf.mxu0  ;;  %2076 = vmatprep.subr.mxu0 %v1305_v16 }
 0x195   : > { %v784_v24 = vpop.f32.mrf.mxu1  ;;  %v2280_v27 = vpop.eup %2279  ;;  %2305 = vtanh.f32 %v778_v14  ;;  %1051 = vmatprep.mubr.f32.mxu0 %v2278_v21  ;;  %2077 = vmatpush3.msra.mxu0 %v1305_v16 }
 0x196   : > { %v2282_v28 = vpop.eup %2281  ;;  %2307 = vtanh.f32 %v623_v23  ;;  %1196 = vmatprep.mubr.f32.mxu1 %v2280_v27  ;;  %v625_v29 = vpop.f32.mrf.mxu0  ;;  %1052 = vmatmul.mubr.f32.gmra.mxu0 %v2276_v20 }
 0x197   : > { %v786_v30 = vpop.f32.mrf.mxu1  ;;  %v2284_v22 = vpop.eup %2283  ;;  %2309 = vtanh.f32 %v625_v29  ;;  %1197 = vmatmul.mubr.f32.gmra.mxu1 %v2282_v28  ;;  %2078 = vmatprep.subr.mxu0 %v1304_v25 }
 0x198   : > { %v2286_v31 = vpop.eup %2285  ;;  %2311 = vtanh.f32 %v786_v30  ;;  %v629_v26 = vpop.f32.mrf.mxu0  ;;  %2079 = vmatpush3.msra.mxu0 %v1304_v25 }
 0x199   : > { %v790_v32 = vpop.f32.mrf.mxu1  ;;  %v2288_v33 = vpop.eup %2287  ;;  %2313 = vtanh.f32 %v784_v24  ;;  %1056 = vmatprep.mubr.f32.mxu0 %v2286_v31  ;;  %2080 = vmatprep.subr.mxu0 %v1303_v1 }
 0x19a   : > { %v2290_v35 = vpop.eup %2289  ;;  %2315 = vtanh.f32 %v629_v26  ;;  %1201 = vmatprep.mubr.f32.mxu1 %v2288_v33  ;;  %v631_v36 = vpop.f32.mrf.mxu0  ;;  %1057 = vmatmul.mubr.f32.gmra.mxu0 %v2284_v22 }
 0x19b   : > { %v792_v37 = vpop.f32.mrf.mxu1  ;;  %v2292_v38 = vpop.eup %2291  ;;  %2317 = vtanh.f32 %v631_v36  ;;  %1202 = vmatmul.mubr.f32.gmra.mxu1 %v2290_v35  ;;  %2081 = vmatpush3.msra.mxu0 %v1303_v1 }
 0x19c   : > { %v2294_v39 = vpop.eup %2293  ;;  %2319 = vtanh.f32 %v792_v37  ;;  %v635_v40 = vpop.f32.mrf.mxu0  ;;  %2082 = vmatprep.subr.mxu0 %v1302_v34 }
 0x19d   : > { %v796_v41 = vpop.f32.mrf.mxu1  ;;  %v2296_v42 = vpop.eup %2295  ;;  %2321 = vtanh.f32 %v790_v32  ;;  %1061 = vmatprep.mubr.f32.mxu0 %v2294_v39  ;;  %2083 = vmatpush3.msra.mxu0 %v1302_v34 }
 0x19e   : > { %v2298_v43 = vpop.eup %2297  ;;  %2323 = vtanh.f32 %v635_v40  ;;  %1206 = vmatprep.mubr.f32.mxu1 %v2296_v42  ;;  %v637_v44 = vpop.f32.mrf.mxu0  ;;  %1062 = vmatmul.mubr.f32.gmra.mxu0 %v2292_v38 }
 0x19f   : > { %v798_v45 = vpop.f32.mrf.mxu1  ;;  %v2300_v46 = vpop.eup %2299  ;;  %2325 = vtanh.f32 %v637_v44  ;;  %1207 = vmatmul.mubr.f32.gmra.mxu1 %v2298_v43 }
 0x1a0   : > { %v2302_v47 = vpop.eup %2301  ;;  %2327 = vtanh.f32 %v798_v45  ;;  %v641_v48 = vpop.f32.mrf.mxu0 }
 0x1a1   : > { %v802_v49 = vpop.f32.mrf.mxu1  ;;  %v2304_v50 = vpop.eup %2303  ;;  %2329 = vtanh.f32 %v796_v41  ;;  %1066 = vmatprep.mubr.f32.mxu0 %v2302_v47  ;;  %v1300_v47 = vld [vmem:[%s2968_s4 + $0x30] sm:$0xff] }
 0x1a2   : > { %v2306_v51 = vpop.eup %2305  ;;  %2331 = vtanh.f32 %v641_v48  ;;  %1211 = vmatprep.mubr.f32.mxu1 %v2304_v50  ;;  %v643_v52 = vpop.f32.mrf.mxu0  ;;  %1067 = vmatmul.mubr.f32.gmra.mxu0 %v2300_v46  ;;  %v1301_v46 = vld [vmem:[%s2968_s4 + $0x38] sm:$0xff]  ;;  %v1299_v48 = vld [vmem:[%s2968_s4 + $0x28] sm:$0xff] }
 0x1a3   : > { %v804_v53 = vpop.f32.mrf.mxu1  ;;  %v2308_v54 = vpop.eup %2307  ;;  %2333 = vtanh.f32 %v643_v52  ;;  %1212 = vmatmul.mubr.f32.gmra.mxu1 %v2306_v51  ;;  %2084 = vmatprep.subr.mxu0 %v1301_v46  ;;  %v1297_v50 = vld [vmem:[%s2968_s4 + $0x18] sm:$0xff]  ;;  %v1296_v51 = vld [vmem:[%s2968_s4 + $0x10] sm:$0xff]  ;;  %v1295_v52 = vld [vmem:[%s2968_s4 + $0x8] sm:$0xff] }
 0x1a4   : > { %v2310_v55 = vpop.eup %2309  ;;  %2335 = vtanh.f32 %v804_v53  ;;  %v647_v56 = vpop.f32.mrf.mxu0  ;;  %2085 = vmatpush3.msra.mxu0 %v1301_v46  ;;  %v1294_v53 = vld [vmem:[%s2968_s4] sm:$0xff] }
 0x1a5   : > { %v808_v57 = vpop.f32.mrf.mxu1  ;;  %v2312_v58 = vpop.eup %2311  ;;  %2337 = vtanh.f32 %v802_v49  ;;  %1071 = vmatprep.mubr.f32.mxu0 %v2310_v55  ;;  %2086 = vmatprep.subr.mxu0 %v1300_v47  ;;  %v1298_v49 = vld [vmem:[%s2968_s4 + $0x20] sm:$0xff]  ;;  %v1508_v55 = vld [vmem:[%s2970_s6 + $0x70] sm:$0xff] }
 0x1a6   : > { %v2314_v59 = vpop.eup %2313  ;;  %2339 = vtanh.f32 %v647_v56  ;;  %1216 = vmatprep.mubr.f32.mxu1 %v2312_v58  ;;  %v649_v60 = vpop.f32.mrf.mxu0  ;;  %1072 = vmatmul.mubr.f32.gmra.mxu0 %v2308_v54  ;;  %v1509_v54 = vld [vmem:[%s2970_s6 + $0x78] sm:$0xff]  ;;  %v1507_v56 = vld [vmem:[%s2970_s6 + $0x68] sm:$0xff] }
 0x1a7   : > { %v810_v61 = vpop.f32.mrf.mxu1  ;;  %v2316_v62 = vpop.eup %2315  ;;  %2341 = vtanh.f32 %v649_v60  ;;  %1217 = vmatmul.mubr.f32.gmra.mxu1 %v2314_v59  ;;  %2087 = vmatpush3.msra.mxu0 %v1300_v47  ;;  %v1505_v58 = vld [vmem:[%s2970_s6 + $0x58] sm:$0xff]  ;;  %v1504_v59 = vld [vmem:[%s2970_s6 + $0x50] sm:$0xff]  ;;  %v1503_v60 = vld [vmem:[%s2970_s6 + $0x48] sm:$0xff] }
 0x1a8   : > { %v2318_v63 = vpop.eup %2317  ;;  %2343 = vtanh.f32 %v810_v61  ;;  %v653_v0 = vpop.f32.mrf.mxu0  ;;  %2088 = vmatprep.subr.mxu0 %v1299_v48  ;;  %2124 = vmatprep.subr.mxu1 %v1509_v54  ;;  %v1502_v61 = vld [vmem:[%s2970_s6 + $0x40] sm:$0xff] }
 0x1a9   : > { %v814_v2 = vpop.f32.mrf.mxu1  ;;  %v2320_v3 = vpop.eup %2319  ;;  %2345 = vtanh.f32 %v808_v57  ;;  %1076 = vmatprep.mubr.f32.mxu0 %v2318_v63  ;;  %2089 = vmatpush3.msra.mxu0 %v1299_v48  ;;  %v1506_v57 = vld [vmem:[%s2970_s6 + $0x60] sm:$0xff]  ;;  %v1500_v63 = vld [vmem:[%s2970_s6 + $0x30] sm:$0xff] }
 0x1aa   : > { %v2322_v4 = vpop.eup %2321  ;;  %2347 = vtanh.f32 %v653_v0  ;;  %1221 = vmatprep.mubr.f32.mxu1 %v2320_v3  ;;  %v655_v5 = vpop.f32.mrf.mxu0  ;;  %1077 = vmatmul.mubr.f32.gmra.mxu0 %v2316_v62  ;;  %v1501_v62 = vld [vmem:[%s2970_s6 + $0x38] sm:$0xff]  ;;  %v1499_v0 = vld [vmem:[%s2970_s6 + $0x28] sm:$0xff] }
 0x1ab   : > { %v816_v6 = vpop.f32.mrf.mxu1  ;;  %v2324_v7 = vpop.eup %2323  ;;  %2349 = vtanh.f32 %v655_v5  ;;  %1222 = vmatmul.mubr.f32.gmra.mxu1 %v2322_v4  ;;  %2090 = vmatprep.subr.mxu0 %v1298_v49  ;;  %v2835_v4 = vld [vmem:[%s2967_s3] ss:$0 sm:$0xff] }
 0x1ac   : > { %v2326_v8 = vpop.eup %2325  ;;  %2351 = vtanh.f32 %v816_v6  ;;  %v659_v9 = vpop.f32.mrf.mxu0  ;;  %2091 = vmatpush3.msra.mxu0 %v1298_v49  ;;  %2125 = vmatpush3.msra.mxu1 %v1509_v54 }
 0x1ad   : > { %v820_v10 = vpop.f32.mrf.mxu1  ;;  %v2328_v11 = vpop.eup %2327  ;;  %2353 = vtanh.f32 %v814_v2  ;;  %1081 = vmatprep.mubr.f32.mxu0 %v2326_v8  ;;  %2092 = vmatprep.subr.mxu0 %v1297_v50 }
 0x1ae   : > { %v2330_v12 = vpop.eup %2329  ;;  %2355 = vtanh.f32 %v659_v9  ;;  %1226 = vmatprep.mubr.f32.mxu1 %v2328_v11  ;;  %v661_v13 = vpop.f32.mrf.mxu0  ;;  %1082 = vmatmul.mubr.f32.gmra.mxu0 %v2324_v7 }
 0x1af   : > { %v822_v14 = vpop.f32.mrf.mxu1  ;;  %v2332_v15 = vpop.eup %2331  ;;  %2357 = vtanh.f32 %v661_v13  ;;  %1227 = vmatmul.mubr.f32.gmra.mxu1 %v2330_v12  ;;  %2093 = vmatpush3.msra.mxu0 %v1297_v50 }
 0x1b0   : > { %v2334_v16 = vpop.eup %2333  ;;  %2359 = vtanh.f32 %v822_v14  ;;  %v665_v17 = vpop.f32.mrf.mxu0  ;;  %2094 = vmatprep.subr.mxu0 %v1296_v51  ;;  %2126 = vmatprep.subr.mxu1 %v1508_v55 }
 0x1b1   : > { %v826_v18 = vpop.f32.mrf.mxu1  ;;  %v2336_v19 = vpop.eup %2335  ;;  %2361 = vtanh.f32 %v820_v10  ;;  %1086 = vmatprep.mubr.f32.mxu0 %v2334_v16  ;;  %2095 = vmatpush3.msra.mxu0 %v1296_v51 }
 0x1b2   : > { %v2338_v20 = vpop.eup %2337  ;;  %2363 = vtanh.f32 %v665_v17  ;;  %1231 = vmatprep.mubr.f32.mxu1 %v2336_v19  ;;  %v667_v21 = vpop.f32.mrf.mxu0  ;;  %1087 = vmatmul.mubr.f32.gmra.mxu0 %v2332_v15 }
 0x1b3   : > { %v828_v23 = vpop.f32.mrf.mxu1  ;;  %v2340_v24 = vpop.eup %2339  ;;  %2365 = vtanh.f32 %v667_v21  ;;  %1232 = vmatmul.mubr.f32.gmra.mxu1 %v2338_v20  ;;  %2096 = vmatprep.subr.mxu0 %v1295_v52 }
 0x1b4   : > { %v2342_v25 = vpop.eup %2341  ;;  %2367 = vtanh.f32 %v828_v23  ;;  %v671_v27 = vpop.f32.mrf.mxu0  ;;  %2097 = vmatpush3.msra.mxu0 %v1295_v52  ;;  %2127 = vmatpush3.msra.mxu1 %v1508_v55 }
 0x1b5   : > { %v832_v28 = vpop.f32.mrf.mxu1  ;;  %v2344_v29 = vpop.eup %2343  ;;  %2369 = vtanh.f32 %v826_v18  ;;  %1091 = vmatprep.mubr.f32.mxu0 %v2342_v25  ;;  %2098 = vmatprep.subr.mxu0 %v1294_v53 }
 0x1b6   : > { %v2346_v30 = vpop.eup %2345  ;;  %2371 = vtanh.f32 %v671_v27  ;;  %1236 = vmatprep.mubr.f32.mxu1 %v2344_v29  ;;  %v673_v1 = vpop.f32.mrf.mxu0  ;;  %1092 = vmatmul.mubr.f32.gmra.mxu0 %v2340_v24 }
 0x1b7   : > { %v834_v22 = vpop.f32.mrf.mxu1  ;;  %v2348_v31 = vpop.eup %2347  ;;  %2373 = vtanh.f32 %v673_v1  ;;  %1237 = vmatmul.mubr.f32.gmra.mxu1 %v2346_v30  ;;  %2099 = vmatpush3.msra.mxu0 %v1294_v53 }
 0x1b8   : > { %v2350_v26 = vpop.eup %2349  ;;  %2375 = vtanh.f32 %v834_v22  ;;  %2128 = vmatprep.subr.mxu1 %v1507_v56 }
 0x1b9   : > { %v2352_v32 = vpop.eup %2351  ;;  %2377 = vtanh.f32 %v832_v28  ;;  %1096 = vmatprep.mubr.f32.mxu0 %v2350_v26  ;;  %2129 = vmatpush3.msra.mxu1 %v1507_v56 }
 0x1ba   : > { %v2354_v33 = vpop.eup %2353  ;;  %1241 = vmatprep.mubr.f32.mxu1 %v2352_v32  ;;  %1097 = vmatmul.mubr.f32.gmra.mxu0 %v2348_v31 }
 0x1bb   : > { %v2356_v34 = vpop.eup %2355  ;;  %1242 = vmatmul.mubr.f32.gmra.mxu1 %v2354_v33  ;;  %2130 = vmatprep.subr.mxu1 %v1506_v57 }
 0x1bc   : > { %v2358_v35 = vpop.eup %2357  ;;  %2131 = vmatpush3.msra.mxu1 %v1506_v57 }
 0x1bd   : > { %v2360_v36 = vpop.eup %2359  ;;  %1101 = vmatprep.mubr.f32.mxu0 %v2358_v35  ;;  %2132 = vmatprep.subr.mxu1 %v1505_v58 }
 0x1be   : > { %v2362_v37 = vpop.eup %2361  ;;  %1246 = vmatprep.mubr.f32.mxu1 %v2360_v36  ;;  %1102 = vmatmul.mubr.f32.gmra.mxu0 %v2356_v34 }
 0x1bf   : > { %v2364_v38 = vpop.eup %2363  ;;  %1247 = vmatmul.mubr.f32.gmra.mxu1 %v2362_v37 }
 0x1c0   : > { %v2366_v39 = vpop.eup %2365  ;;  %2133 = vmatpush3.msra.mxu1 %v1505_v58 }
 0x1c1   : > { %v2368_v40 = vpop.eup %2367  ;;  %1106 = vmatprep.mubr.f32.mxu0 %v2366_v39  ;;  %2134 = vmatprep.subr.mxu1 %v1504_v59 }
 0x1c2   : > { %v2370_v41 = vpop.eup %2369  ;;  %1251 = vmatprep.mubr.f32.mxu1 %v2368_v40  ;;  %1107 = vmatmul.mubr.f32.gmra.mxu0 %v2364_v38 }
 0x1c3   : > { %v2372_v42 = vpop.eup %2371  ;;  %1252 = vmatmul.mubr.f32.gmra.mxu1 %v2370_v41 }
 0x1c4   : > { %v2374_v43 = vpop.eup %2373  ;;  %2135 = vmatpush3.msra.mxu1 %v1504_v59 }
 0x1c5   : > { %v2376_v44 = vpop.eup %2375  ;;  %1111 = vmatprep.mubr.f32.mxu0 %v2374_v43  ;;  %2136 = vmatprep.subr.mxu1 %v1503_v60 }
 0x1c6   : > { %v2378_v45 = vpop.eup %2377  ;;  %1256 = vmatprep.mubr.f32.mxu1 %v2376_v44  ;;  %1112 = vmatmul.mubr.f32.gmra.mxu0 %v2372_v42 }
 0x1c7   : > { %1257 = vmatmul.mubr.f32.gmra.mxu1 %v2378_v45 }
 0x1c8   : > { %2137 = vmatpush3.msra.mxu1 %v1503_v60 }
 0x1c9   : > { %2138 = vmatprep.subr.mxu1 %v1502_v61 }
 0x1ca   : > { %2139 = vmatpush3.msra.mxu1 %v1502_v61 }
 0x1cb   : > { %2140 = vmatprep.subr.mxu1 %v1501_v62 }
 0x1cc   : > { %2141 = vmatpush3.msra.mxu1 %v1501_v62 }
 0x1cd   : > { %2142 = vmatprep.subr.mxu1 %v1500_v63 }
 0x1ce   : > { %2143 = vmatpush3.msra.mxu1 %v1500_v63 }
 0x1cf   : > { %2144 = vmatprep.subr.mxu1 %v1499_v0 }
 0x1d0   : > { %2145 = vmatpush3.msra.mxu1 %v1499_v0 }
 0x24a   : > { %v1876_v2 = vpop.f32.mrf.mxu0 }
 0x24b   : > { %v1956_v3 = vpop.f32.mrf.mxu1 }
 0x24c   : > { %v1877_v5 = vpop.f32.mrf.mxu0 }
 0x24d   : > { %v1878_v6 = vadd.f32 %v1877_v5, %v1876_v2  ;;  %v1957_v7 = vpop.f32.mrf.mxu1 }
 0x24e   : > { %v1879_v8 = vpop.f32.mrf.mxu0  ;;  %v1958_v10 = vadd.f32 %v1957_v7, %v1956_v3 }
 0x24f   : > { %v1039_v9 = vadd.f32 %v1878_v6, %v2835_v4  ;;  %v1959_v11 = vpop.f32.mrf.mxu1 }
 0x250   : > { %v1880_v12 = vpop.f32.mrf.mxu0 }
 0x251   : > { %v1184_v13 = vadd.f32 %v1958_v10, %v1039_v9  ;;  %v1881_v14 = vadd.f32 %v1880_v12, %v1879_v8  ;;  %v1960_v15 = vpop.f32.mrf.mxu1 }
 0x252   : > { %v1882_v16 = vpop.f32.mrf.mxu0  ;;  %v1961_v19 = vadd.f32 %v1960_v15, %v1959_v11 }
 0x253   : > { %v1262_v17 = vmul.f32 0.01, %v1184_v13  ;;  %v1044_v18 = vadd.f32 %v1881_v14, %v2835_v4  ;;  %v1962_v20 = vpop.f32.mrf.mxu1 }
 0x254   : > { %v1883_v21 = vpop.f32.mrf.mxu0 }
 0x255   : > { %v1189_v23 = vadd.f32 %v1961_v19, %v1044_v18  ;;  %v1884_v24 = vadd.f32 %v1883_v21, %v1882_v16  ;;  %v1963_v25 = vpop.f32.mrf.mxu1  ;;  %v1278_v27 = vmax.f32 %v1184_v13, %v1262_v17 }
 0x256   : > { %v1885_v28 = vpop.f32.mrf.mxu0  ;;  %v1964_v1 = vadd.f32 %v1963_v25, %v1962_v20 }
 0x257   : > { %v1263_v29 = vmul.f32 0.01, %v1189_v23  ;;  %v1049_v30 = vadd.f32 %v1884_v24, %v2835_v4  ;;  %v1965_v22 = vpop.f32.mrf.mxu1  ;;  %2100 = vmatprep.mubr.f32.mxu0 %v1278_v27 }
 0x258   : > { %v1886_v31 = vpop.f32.mrf.mxu0 }
 0x259   : > { %v1279_v26 = vmax.f32 %v1189_v23, %v1263_v29  ;;  %v1194_v32 = vadd.f32 %v1964_v1, %v1049_v30  ;;  %v1887_v33 = vadd.f32 %v1886_v31, %v1885_v28  ;;  %v1966_v34 = vpop.f32.mrf.mxu1 }
 0x25a   : > { %v1888_v35 = vpop.f32.mrf.mxu0  ;;  %v1967_v38 = vadd.f32 %v1966_v34, %v1965_v22 }
 0x25b   : > { %v1264_v36 = vmul.f32 0.01, %v1194_v32  ;;  %v1054_v37 = vadd.f32 %v1887_v33, %v2835_v4  ;;  %v1968_v39 = vpop.f32.mrf.mxu1  ;;  %2101 = vmatmul.mubr.f32.vlgmr.msra.gmra.mxu0 %v1279_v26 }
 0x25c   : > { %v1889_v40 = vpop.f32.mrf.mxu0 }
 0x25d   : > { %v1199_v41 = vadd.f32 %v1967_v38, %v1054_v37  ;;  %v1890_v42 = vadd.f32 %v1889_v40, %v1888_v35  ;;  %v1969_v43 = vpop.f32.mrf.mxu1  ;;  %v1280_v44 = vmax.f32 %v1194_v32, %v1264_v36 }
 0x25e   : > { %v1891_v45 = vpop.f32.mrf.mxu0  ;;  %v1970_v48 = vadd.f32 %v1969_v43, %v1968_v39 }
 0x25f   : > { %v1265_v46 = vmul.f32 0.01, %v1199_v41  ;;  %v1059_v47 = vadd.f32 %v1890_v42, %v2835_v4  ;;  %v1971_v49 = vpop.f32.mrf.mxu1  ;;  %2103 = vmatprep.mubr.f32.mxu0 %v1280_v44 }
 0x260   : > { %v1892_v50 = vpop.f32.mrf.mxu0 }
 0x261   : > { %v1204_v51 = vadd.f32 %v1970_v48, %v1059_v47  ;;  %v1893_v52 = vadd.f32 %v1892_v50, %v1891_v45  ;;  %v1972_v53 = vpop.f32.mrf.mxu1  ;;  %v1281_v54 = vmax.f32 %v1199_v41, %v1265_v46 }
 0x262   : > { %v1894_v55 = vpop.f32.mrf.mxu0  ;;  %v1973_v58 = vadd.f32 %v1972_v53, %v1971_v49 }
 0x263   : > { %v1266_v56 = vmul.f32 0.01, %v1204_v51  ;;  %v1064_v57 = vadd.f32 %v1893_v52, %v2835_v4  ;;  %v1974_v59 = vpop.f32.mrf.mxu1  ;;  %2104 = vmatmul.mubr.f32.gmra.mxu0 %v1281_v54 }
 0x264   : > { %v1895_v60 = vpop.f32.mrf.mxu0 }
 0x265   : > { %v1209_v61 = vadd.f32 %v1973_v58, %v1064_v57  ;;  %v1896_v62 = vadd.f32 %v1895_v60, %v1894_v55  ;;  %v1975_v63 = vpop.f32.mrf.mxu1  ;;  %v1282_v0 = vmax.f32 %v1204_v51, %v1266_v56 }
 0x266   : > { %v1897_v2 = vpop.f32.mrf.mxu0  ;;  %v1976_v6 = vadd.f32 %v1975_v63, %v1974_v59 }
 0x267   : > { %v1267_v3 = vmul.f32 0.01, %v1209_v61  ;;  %v1069_v5 = vadd.f32 %v1896_v62, %v2835_v4  ;;  %v1977_v7 = vpop.f32.mrf.mxu1  ;;  %2106 = vmatprep.mubr.f32.mxu0 %v1282_v0 }
 0x268   : > { %v1898_v8 = vpop.f32.mrf.mxu0 }
 0x269   : > { %v1214_v9 = vadd.f32 %v1976_v6, %v1069_v5  ;;  %v1899_v10 = vadd.f32 %v1898_v8, %v1897_v2  ;;  %v1978_v11 = vpop.f32.mrf.mxu1  ;;  %v1283_v12 = vmax.f32 %v1209_v61, %v1267_v3 }
 0x26a   : > { %v1900_v13 = vpop.f32.mrf.mxu0  ;;  %v1979_v16 = vadd.f32 %v1978_v11, %v1977_v7 }
 0x26b   : > { %v1268_v14 = vmul.f32 0.01, %v1214_v9  ;;  %v1074_v15 = vadd.f32 %v1899_v10, %v2835_v4  ;;  %v1980_v17 = vpop.f32.mrf.mxu1  ;;  %2107 = vmatmul.mubr.f32.gmra.mxu0 %v1283_v12 }
 0x26c   : > { %v1901_v18 = vpop.f32.mrf.mxu0 }
 0x26d   : > { %v1219_v19 = vadd.f32 %v1979_v16, %v1074_v15  ;;  %v1902_v20 = vadd.f32 %v1901_v18, %v1900_v13  ;;  %v1981_v21 = vpop.f32.mrf.mxu1  ;;  %v1284_v23 = vmax.f32 %v1214_v9, %v1268_v14 }
 0x26e   : > { %v1903_v24 = vpop.f32.mrf.mxu0  ;;  %v1982_v28 = vadd.f32 %v1981_v21, %v1980_v17 }
 0x26f   : > { %v1269_v25 = vmul.f32 0.01, %v1219_v19  ;;  %v1079_v27 = vadd.f32 %v1902_v20, %v2835_v4  ;;  %v1983_v29 = vpop.f32.mrf.mxu1  ;;  %2109 = vmatprep.mubr.f32.mxu0 %v1284_v23 }
 0x270   : > { %v1904_v30 = vpop.f32.mrf.mxu0 }
 0x271   : > { %v1224_v1 = vadd.f32 %v1982_v28, %v1079_v27  ;;  %v1905_v22 = vadd.f32 %v1904_v30, %v1903_v24  ;;  %v1984_v31 = vpop.f32.mrf.mxu1  ;;  %v1285_v26 = vmax.f32 %v1219_v19, %v1269_v25 }
 0x272   : > { %v1906_v32 = vpop.f32.mrf.mxu0  ;;  %v1985_v35 = vadd.f32 %v1984_v31, %v1983_v29 }
 0x273   : > { %v1270_v33 = vmul.f32 0.01, %v1224_v1  ;;  %v1084_v34 = vadd.f32 %v1905_v22, %v2835_v4  ;;  %v1986_v36 = vpop.f32.mrf.mxu1  ;;  %2110 = vmatmul.mubr.f32.gmra.mxu0 %v1285_v26 }
 0x274   : > { %v1907_v37 = vpop.f32.mrf.mxu0 }
 0x275   : > { %v1229_v38 = vadd.f32 %v1985_v35, %v1084_v34  ;;  %v1908_v39 = vadd.f32 %v1907_v37, %v1906_v32  ;;  %v1987_v40 = vpop.f32.mrf.mxu1  ;;  %v1286_v41 = vmax.f32 %v1224_v1, %v1270_v33  ;;  %v1497_v37 = vld [vmem:[%s2970_s6 + $0x18] sm:$0xff] }
 0x276   : > { %v1909_v42 = vpop.f32.mrf.mxu0  ;;  %v1988_v45 = vadd.f32 %v1987_v40, %v1986_v36  ;;  %v1498_v36 = vld [vmem:[%s2970_s6 + $0x20] sm:$0xff] }
 0x277   : > { %v1271_v43 = vmul.f32 0.01, %v1229_v38  ;;  %v1089_v44 = vadd.f32 %v1908_v39, %v2835_v4  ;;  %v1989_v46 = vpop.f32.mrf.mxu1  ;;  %2112 = vmatprep.mubr.f32.mxu0 %v1286_v41  ;;  %2146 = vmatprep.subr.mxu1 %v1498_v36  ;;  %v1494_v39 = vld [vmem:[%s2970_s6] sm:$0xff] }
 0x278   : > { %v1910_v47 = vpop.f32.mrf.mxu0  ;;  %2147 = vmatpush3.msra.mxu1 %v1498_v36  ;;  %v2871_v40 = vld [vmem:[%s2969_s5] ss:$0 sm:$0xff] }
 0x279   : > { %v1234_v48 = vadd.f32 %v1988_v45, %v1089_v44  ;;  %v1911_v49 = vadd.f32 %v1910_v47, %v1909_v42  ;;  %v1990_v50 = vpop.f32.mrf.mxu1  ;;  %v1287_v51 = vmax.f32 %v1229_v38, %v1271_v43  ;;  %2148 = vmatprep.subr.mxu1 %v1497_v37  ;;  %v1495_v38 = vld [vmem:[%s2970_s6 + $0x8] sm:$0xff] }
 0x27a   : > { %v1912_v52 = vpop.f32.mrf.mxu0  ;;  %v1991_v55 = vadd.f32 %v1990_v50, %v1989_v46  ;;  %2149 = vmatpush3.msra.mxu1 %v1497_v37 }
 0x27b   : > { %v1272_v53 = vmul.f32 0.01, %v1234_v48  ;;  %v1094_v54 = vadd.f32 %v1911_v49, %v2835_v4  ;;  %v1992_v56 = vpop.f32.mrf.mxu1  ;;  %2113 = vmatmul.mubr.f32.gmra.mxu0 %v1287_v51 }
 0x27c   : > { %v1913_v57 = vpop.f32.mrf.mxu0 }
 0x27d   : > { %v1239_v58 = vadd.f32 %v1991_v55, %v1094_v54  ;;  %v1914_v59 = vadd.f32 %v1913_v57, %v1912_v52  ;;  %v1993_v60 = vpop.f32.mrf.mxu1  ;;  %v1288_v61 = vmax.f32 %v1234_v48, %v1272_v53 }
 0x27e   : > { %v1915_v62 = vpop.f32.mrf.mxu0  ;;  %v1994_v2 = vadd.f32 %v1993_v60, %v1992_v56 }
 0x27f   : > { %v1273_v63 = vmul.f32 0.01, %v1239_v58  ;;  %v1099_v0 = vadd.f32 %v1914_v59, %v2835_v4  ;;  %v1995_v3 = vpop.f32.mrf.mxu1  ;;  %2115 = vmatprep.mubr.f32.mxu0 %v1288_v61 }
 0x280   : > { %v1916_v5 = vpop.f32.mrf.mxu0 }
 0x281   : > { %v1244_v6 = vadd.f32 %v1994_v2, %v1099_v0  ;;  %v1917_v7 = vadd.f32 %v1916_v5, %v1915_v62  ;;  %v1996_v8 = vpop.f32.mrf.mxu1  ;;  %v1289_v9 = vmax.f32 %v1239_v58, %v1273_v63 }
 0x282   : > { %v1918_v10 = vpop.f32.mrf.mxu0  ;;  %v1997_v13 = vadd.f32 %v1996_v8, %v1995_v3 }
 0x283   : > { %v1274_v11 = vmul.f32 0.01, %v1244_v6  ;;  %v1104_v12 = vadd.f32 %v1917_v7, %v2835_v4  ;;  %v1998_v14 = vpop.f32.mrf.mxu1  ;;  %2116 = vmatmul.mubr.f32.gmra.mxu0 %v1289_v9 }
 0x284   : > { %v1919_v15 = vpop.f32.mrf.mxu0 }
 0x285   : > { %v1249_v16 = vadd.f32 %v1997_v13, %v1104_v12  ;;  %v1920_v17 = vadd.f32 %v1919_v15, %v1918_v10  ;;  %v1999_v18 = vpop.f32.mrf.mxu1  ;;  %v1290_v19 = vmax.f32 %v1244_v6, %v1274_v11 }
 0x286   : > { %v1921_v20 = vpop.f32.mrf.mxu0  ;;  %v2000_v24 = vadd.f32 %v1999_v18, %v1998_v14 }
 0x287   : > { %v1275_v21 = vmul.f32 0.01, %v1249_v16  ;;  %v1109_v23 = vadd.f32 %v1920_v17, %v2835_v4  ;;  %v2001_v25 = vpop.f32.mrf.mxu1  ;;  %2118 = vmatprep.mubr.f32.mxu0 %v1290_v19 }
 0x288   : > { %v1922_v27 = vpop.f32.mrf.mxu0 }
 0x289   : > { %v1254_v28 = vadd.f32 %v2000_v24, %v1109_v23  ;;  %v1923_v29 = vadd.f32 %v1922_v27, %v1921_v20  ;;  %v2002_v30 = vpop.f32.mrf.mxu1  ;;  %v1291_v1 = vmax.f32 %v1249_v16, %v1275_v21 }
 0x28a   : > { %v2003_v26 = vadd.f32 %v2002_v30, %v2001_v25 }
 0x28b   : > { %v1276_v22 = vmul.f32 0.01, %v1254_v28  ;;  %v1114_v31 = vadd.f32 %v1923_v29, %v2835_v4  ;;  %2119 = vmatmul.mubr.f32.gmra.mxu0 %v1291_v1  ;;  %v1496_v4 = vld [vmem:[%s2970_s6 + $0x10] sm:$0xff] }
 0x28c   : > { %2150 = vmatprep.subr.mxu1 %v1496_v4 }
 0x28d   : > { %v1259_v32 = vadd.f32 %v2003_v26, %v1114_v31  ;;  %v1292_v33 = vmax.f32 %v1254_v28, %v1276_v22  ;;  %2151 = vmatpush3.msra.mxu1 %v1496_v4 }
 0x28e   : > { %2152 = vmatprep.subr.mxu1 %v1495_v38 }
 0x28f   : > { %v1277_v34 = vmul.f32 0.01, %v1259_v32  ;;  %2121 = vmatprep.mubr.f32.mxu0 %v1292_v33  ;;  %2153 = vmatpush3.msra.mxu1 %v1495_v38 }
 0x290   : > { %2154 = vmatprep.subr.mxu1 %v1494_v39 }
 0x291   : > { %v1293_v35 = vmax.f32 %v1259_v32, %v1277_v34  ;;  %2155 = vmatpush3.msra.mxu1 %v1494_v39 }
 0x293   : > { %2122 = vmatmul.mubr.f32.gmra.mxu0 %v1293_v35 }
 0x31b   : > { %v2102_v41 = vpop.f32.mrf.mxu0 }
 0x31c   : > { %v1389_v42 = vadd.f32 %v2102_v41, %v2871_v40 }
 0x31d   : > { %v1383_v43 = vpop.f32.mrf.mxu0 }
 0x31e   : > { %v1384_v44 = vadd.f32 %v2871_v40, %v1383_v43  ;;  %v1463_v45 = vmul.f32 0.01, %v1389_v42 }
 0x320   : > { %v1462_v46 = vmul.f32 0.01, %v1384_v44  ;;  %v1479_v48 = vmax.f32 %v1389_v42, %v1463_v45  ;;  %v1837_v42 = vld [vmem:[%s2971_s7] ss:$0 sm:$0xff] }
 0x322   : > { %v1478_v47 = vmax.f32 %v1384_v44, %v1462_v46 }
 0x323   : > { %v2105_v49 = vpop.f32.mrf.mxu0 }
 0x324   : > { %v1399_v50 = vadd.f32 %v2105_v49, %v2871_v40  ;;  %2156 = vmatprep.mubr.f32.mxu1 %v1478_v47 }
 0x325   : > { %v1393_v51 = vpop.f32.mrf.mxu0  ;;  %2157 = vmatmul.mubr.f32.vlgmr.msra.gmra.mxu1 %v1479_v48 }
 0x326   : > { %v1394_v52 = vadd.f32 %v2871_v40, %v1393_v51  ;;  %v1465_v53 = vmul.f32 0.01, %v1399_v50 }
 0x328   : > { %v1464_v54 = vmul.f32 0.01, %v1394_v52  ;;  %v1481_v56 = vmax.f32 %v1399_v50, %v1465_v53 }
 0x32a   : > { %v1480_v55 = vmax.f32 %v1394_v52, %v1464_v54 }
 0x32b   : > { %v2108_v57 = vpop.f32.mrf.mxu0 }
 0x32c   : > { %v1409_v58 = vadd.f32 %v2108_v57, %v2871_v40  ;;  %2159 = vmatprep.mubr.f32.mxu1 %v1480_v55 }
 0x32d   : > { %v1403_v59 = vpop.f32.mrf.mxu0  ;;  %2160 = vmatmul.mubr.f32.gmra.mxu1 %v1481_v56 }
 0x32e   : > { %v1404_v60 = vadd.f32 %v2871_v40, %v1403_v59  ;;  %v1467_v61 = vmul.f32 0.01, %v1409_v58 }
 0x330   : > { %v1466_v62 = vmul.f32 0.01, %v1404_v60  ;;  %v1483_v0 = vmax.f32 %v1409_v58, %v1467_v61 }
 0x332   : > { %v1482_v63 = vmax.f32 %v1404_v60, %v1466_v62 }
 0x333   : > { %v2111_v2 = vpop.f32.mrf.mxu0 }
 0x334   : > { %v1419_v3 = vadd.f32 %v2111_v2, %v2871_v40  ;;  %2162 = vmatprep.mubr.f32.mxu1 %v1482_v63 }
 0x335   : > { %v1413_v5 = vpop.f32.mrf.mxu0  ;;  %2163 = vmatmul.mubr.f32.gmra.mxu1 %v1483_v0 }
 0x336   : > { %v1414_v6 = vadd.f32 %v2871_v40, %v1413_v5  ;;  %v1469_v7 = vmul.f32 0.01, %v1419_v3 }
 0x338   : > { %v1468_v8 = vmul.f32 0.01, %v1414_v6  ;;  %v1485_v10 = vmax.f32 %v1419_v3, %v1469_v7 }
 0x33a   : > { %v1484_v9 = vmax.f32 %v1414_v6, %v1468_v8 }
 0x33b   : > { %v2114_v11 = vpop.f32.mrf.mxu0 }
 0x33c   : > { %v1429_v12 = vadd.f32 %v2114_v11, %v2871_v40  ;;  %2165 = vmatprep.mubr.f32.mxu1 %v1484_v9 }
 0x33d   : > { %v1423_v13 = vpop.f32.mrf.mxu0  ;;  %2166 = vmatmul.mubr.f32.gmra.mxu1 %v1485_v10 }
 0x33e   : > { %v1424_v14 = vadd.f32 %v2871_v40, %v1423_v13  ;;  %v1471_v15 = vmul.f32 0.01, %v1429_v12 }
 0x340   : > { %v1470_v16 = vmul.f32 0.01, %v1424_v14  ;;  %v1487_v18 = vmax.f32 %v1429_v12, %v1471_v15 }
 0x342   : > { %v1486_v17 = vmax.f32 %v1424_v14, %v1470_v16 }
 0x343   : > { %v2117_v19 = vpop.f32.mrf.mxu0 }
 0x344   : > { %v1439_v20 = vadd.f32 %v2117_v19, %v2871_v40  ;;  %2168 = vmatprep.mubr.f32.mxu1 %v1486_v17 }
 0x345   : > { %v1433_v21 = vpop.f32.mrf.mxu0  ;;  %2169 = vmatmul.mubr.f32.gmra.mxu1 %v1487_v18 }
 0x346   : > { %v1434_v23 = vadd.f32 %v2871_v40, %v1433_v21  ;;  %v1473_v24 = vmul.f32 0.01, %v1439_v20 }
 0x348   : > { %v1472_v25 = vmul.f32 0.01, %v1434_v23  ;;  %v1489_v28 = vmax.f32 %v1439_v20, %v1473_v24 }
 0x34a   : > { %v1488_v27 = vmax.f32 %v1434_v23, %v1472_v25 }
 0x34b   : > { %v2120_v29 = vpop.f32.mrf.mxu0 }
 0x34c   : > { %v1449_v30 = vadd.f32 %v2120_v29, %v2871_v40  ;;  %2171 = vmatprep.mubr.f32.mxu1 %v1488_v27 }
 0x34d   : > { %v1443_v1 = vpop.f32.mrf.mxu0  ;;  %2172 = vmatmul.mubr.f32.gmra.mxu1 %v1489_v28 }
 0x34e   : > { %v1444_v22 = vadd.f32 %v2871_v40, %v1443_v1  ;;  %v1475_v31 = vmul.f32 0.01, %v1449_v30 }
 0x350   : > { %v1474_v26 = vmul.f32 0.01, %v1444_v22  ;;  %v1491_v33 = vmax.f32 %v1449_v30, %v1475_v31 }
 0x352   : > { %v1490_v32 = vmax.f32 %v1444_v22, %v1474_v26 }
 0x353   : > { %v2123_v34 = vpop.f32.mrf.mxu0 }
 0x354   : > { %v1459_v35 = vadd.f32 %v2123_v34, %v2871_v40  ;;  %2174 = vmatprep.mubr.f32.mxu1 %v1490_v32 }
 0x355   : > { %v1453_v36 = vpop.f32.mrf.mxu0  ;;  %2175 = vmatmul.mubr.f32.gmra.mxu1 %v1491_v33 }
 0x356   : > { %v1454_v37 = vadd.f32 %v2871_v40, %v1453_v36  ;;  %v1477_v4 = vmul.f32 0.01, %v1459_v35 }
 0x358   : > { %v1476_v38 = vmul.f32 0.01, %v1454_v37  ;;  %v1493_v41 = vmax.f32 %v1459_v35, %v1477_v4 }
 0x35a   : > { %v1492_v39 = vmax.f32 %v1454_v37, %v1476_v38 }
 0x35c   : > { %2177 = vmatprep.mubr.f32.mxu1 %v1492_v39 }
 0x35d   : > { %2178 = vmatmul.mubr.f32.gmra.mxu1 %v1493_v41 }
 0x3e5   : > { %v2158_v43 = vpop.f32.mrf.mxu1 }
 0x3e6   : > { %v1589_v44 = vadd.f32 %v2158_v43, %v1837_v42 }
 0x3e7   : > { %v1583_v45 = vpop.f32.mrf.mxu1 }
 0x3e8   : > { %1663 = vst [vmem:[%s2895_s23 + $0x8] sm:$0xff] %v1589_v44  ;;  %v1584_v40 = vadd.f32 %v1837_v42, %v1583_v45 }
 0x3ea   : > { %1662 = vst [vmem:[%s2895_s23] sm:$0xff] %v1584_v40 }
 0x3ed   : > { %v2161_v46 = vpop.f32.mrf.mxu1 }
 0x3ee   : > { %v1599_v47 = vadd.f32 %v2161_v46, %v1837_v42 }
 0x3ef   : > { %v1593_v48 = vpop.f32.mrf.mxu1 }
 0x3f0   : > { %1665 = vst [vmem:[%s2895_s23 + $0x18] sm:$0xff] %v1599_v47  ;;  %v1594_v49 = vadd.f32 %v1837_v42, %v1593_v48 }
 0x3f2   : > { %1664 = vst [vmem:[%s2895_s23 + $0x10] sm:$0xff] %v1594_v49 }
 0x3f5   : > { %v2164_v50 = vpop.f32.mrf.mxu1 }
 0x3f6   : > { %v1609_v51 = vadd.f32 %v2164_v50, %v1837_v42 }
 0x3f7   : > { %v1603_v52 = vpop.f32.mrf.mxu1 }
 0x3f8   : > { %1667 = vst [vmem:[%s2895_s23 + $0x28] sm:$0xff] %v1609_v51  ;;  %v1604_v53 = vadd.f32 %v1837_v42, %v1603_v52 }
 0x3fa   : > { %1666 = vst [vmem:[%s2895_s23 + $0x20] sm:$0xff] %v1604_v53 }
 0x3fd   : > { %v2167_v54 = vpop.f32.mrf.mxu1 }
 0x3fe   : > { %v1619_v55 = vadd.f32 %v2167_v54, %v1837_v42 }
 0x3ff   : > { %v1613_v56 = vpop.f32.mrf.mxu1 }
 0x400   : > { %1669 = vst [vmem:[%s2895_s23 + $0x38] sm:$0xff] %v1619_v55  ;;  %v1614_v57 = vadd.f32 %v1837_v42, %v1613_v56 }
 0x402   : > { %1668 = vst [vmem:[%s2895_s23 + $0x30] sm:$0xff] %v1614_v57 }
 0x405   : > { %v2170_v58 = vpop.f32.mrf.mxu1 }
 0x406   : > { %v1629_v59 = vadd.f32 %v2170_v58, %v1837_v42 }
 0x407   : > { %v1623_v60 = vpop.f32.mrf.mxu1 }
 0x408   : > { %1671 = vst [vmem:[%s2895_s23 + $0x48] sm:$0xff] %v1629_v59  ;;  %v1624_v61 = vadd.f32 %v1837_v42, %v1623_v60 }
 0x40a   : > { %1670 = vst [vmem:[%s2895_s23 + $0x40] sm:$0xff] %v1624_v61 }
 0x40d   : > { %v2173_v62 = vpop.f32.mrf.mxu1 }
 0x40e   : > { %v1639_v63 = vadd.f32 %v2173_v62, %v1837_v42 }
 0x40f   : > { %v1633_v0 = vpop.f32.mrf.mxu1 }
 0x410   : > { %1673 = vst [vmem:[%s2895_s23 + $0x58] sm:$0xff] %v1639_v63  ;;  %v1634_v2 = vadd.f32 %v1837_v42, %v1633_v0 }
 0x412   : > { %1672 = vst [vmem:[%s2895_s23 + $0x50] sm:$0xff] %v1634_v2 }
 0x415   : > { %v2176_v3 = vpop.f32.mrf.mxu1 }
 0x416   : > { %v1649_v5 = vadd.f32 %v2176_v3, %v1837_v42 }
 0x417   : > { %v1643_v6 = vpop.f32.mrf.mxu1 }
 0x418   : > { %1675 = vst [vmem:[%s2895_s23 + $0x68] sm:$0xff] %v1649_v5  ;;  %v1644_v7 = vadd.f32 %v1837_v42, %v1643_v6 }
 0x41a   : > { %1674 = vst [vmem:[%s2895_s23 + $0x60] sm:$0xff] %v1644_v7 }
 0x41d   : > { %v2179_v8 = vpop.f32.mrf.mxu1 }
 0x41e   : > { %v1659_v9 = vadd.f32 %v2179_v8, %v1837_v42 }
 0x41f   : > { %v1653_v10 = vpop.f32.mrf.mxu1 }
 0x420   : > { %1677 = vst [vmem:[%s2895_s23 + $0x78] sm:$0xff] %v1659_v9  ;;  %v1654_v11 = vadd.f32 %v1837_v42, %v1653_v10 }
 0x422   : > { %1676 = vst [vmem:[%s2895_s23 + $0x70] sm:$0xff] %v1654_v11 }
 0x423   : > { %2444 = shalt.err (!%p2441_p3)
}
 0x424   : > { %s2445_s12 = scalar_lea.hbm %s2916_s24, 2048  ;;  %s2449_s23 = scalar_lea.hbm %s2972_s8, 6144 }
 0x425   : > { %p2446_p2 = scmp.ne.s32.totalorder %s2916_s24, %s2445_s12  ;;  %p2450_p6 = scmp.lt.s32.totalorder %s2916_s24, %s2972_s8 }
 0x426   : > { %p2451_p9 = scmp.lt.s32.totalorder %s2449_s23, %s2445_s12 }
 0x427   : > { %p2447_p4 = pnand %p2446_p2, %p2596_p5 }
 0x428   : > { %p2452_p12 = por %p2451_p9, %p2450_p6 }
 0x429   : > { %p2448_p13 = pneg %p2447_p4 }
 0x42b   : > { %p2453_p10 = pnand %p2452_p12, %p2448_p13 }
 0x42d   : > { %2456 = shalt.err (!%p2453_p10)
}
 0x42e   : > { %s2511_s22 = smov 128   ;;  %s2512_s9 = smov 8  }
 0x42f   : > { %2188 = dma.vmem_to_hbm [thread:$0]  (%p2596_p5), %s2918_s17, 2048, %s2916_s24, %s2924_s25, %s2511_s22, %s2511_s22, %s2512_s9  }
 0x430 PF: > { %p2205_p7 = scmp.ge.s32.totalorder %s2499_s30, 2  ;;  %s1707_s26 = sand.u32 1, %s2487_s27  }
 0x431   : > { %p2982_p8 = scmp.ne.s32.totalorder %s2975_s16, 0  ;;  %s1708_s10 = scalar_lea.sflag [#allocation4], %s1707_s26 }
 0x433   : > { %p2198_p11 = pnand %p2205_p7, %p2982_p8 }
 0x435   : > { %p2199_p0 = pneg %p2198_p11 }
 0x437   : > { %2482 = dma.done.wait (%p2199_p0), %s1708_s10, 2048  }
 0x438   : > { %2484 = vsyncadd (%p2199_p0), %s1708_s10, 4294965248  ;;  %p20_p1 = scmp.ge.s32.totalorder %s2583_s11, 5   ;;  %s2983_s27 = smov %s2491_s28 }
 0x439   : > { %s2984_s28 = smov %s2495_s29  ;;  %s2985_s29 = smov %s2594_s14 }
 0x43a   : > { %s2986_s30 = smov %s2583_s11  ;;  %22 = sbr.rel (!%p20_p1) target bundleno = 5 (0x5), region = 96 }
 0x43f   :  { %1713 = vsyncpa [#allocation3], 1 }
 0x440   :  { %1715 = vsyncpa [#allocation3 + $0x1], 1 }
 0x441   :  { %1716 = vsyncpa [#allocation6], 1 }
 0x442   :  { %1717 = vsyncpa [#allocation4], 1 }
 0x443   :  { %1719 = vsyncpa [#allocation4 + $0x1], 1 }

</bundles_post_ra>
